<compile_context>
chip_gen: v5e
topology: v5e:2x2
jax: 0.10.0
libtpu: 0.0.40
codegen_flags: <defaults>
</compile_context>

<pallas_src>
import functools
import math

import jax
import jax.numpy as jnp
from jax.experimental import pallas as pl
from jax.experimental.pallas import tpu as pltpu


# --------------------------------------------------------------------------
# Fused Pallas kernel: stage1 (1x1x1) -> im2col-as-lane-shifts -> (core@last) + bias
# --------------------------------------------------------------------------

def _tucker_fused_kernel(x_ref, w1_ref, w2_ref, b_ref, o_ref, *, offsets, mz):
    # x_ref : (1, Cin, Mp)      one padded sample, channels-first, spatial flattened
    # w1_ref: (Rin, Cin)        stage-1 1x1x1 conv weight
    # w2_ref: (K^3, Cout, Rin)  per-tap pre-composed (core @ last) weight
    # b_ref : (Cout, 1)         bias
    # o_ref : (1, Cout, Mz)     stride-1 conv output on the padded flat grid
    x = x_ref[0]                                                   # (Cin, Mp)

    # Stage 1: pointwise channel mix; result stays in VMEM/vregs (no HBM round trip).
    y1 = jnp.dot(w1_ref[...], x, preferred_element_type=jnp.float32)   # (Rin, Mp)

    # Stages 2 + 3: K^3 lane-shifted views of y1 contracted against the composed
    # (core @ last) weight, accumulated in f32; bias added once at the end.
    cout = b_ref.shape[0]
    acc = jnp.zeros((cout, mz), jnp.float32)
    for t, off in enumerate(offsets):                              # static unroll (K^3 taps)
        acc = acc + jnp.dot(w2_ref[t], y1[:, off:off + mz],
                            preferred_element_type=jnp.float32)
    o_ref[0] = acc + b_ref[...]


# --------------------------------------------------------------------------
# Tucker forward (wrapper / glue)
# --------------------------------------------------------------------------

@functools.partial(jax.jit, static_argnames=("stride", "padding", "dilation"))
def tucker_forward(x_ncdhw, w1, wc, wl, bias, *, stride, padding, dilation):
    """Forward of Tucker.seq: Conv3d(1x1) -> Conv3d(KxKxK) -> Conv3d(1x1)+bias.

    x_ncdhw: (N, Cin, D, H, W) float32 (PyTorch NCDHW)
    w1: (R_in, Cin, 1, 1, 1), wc: (R_out, R_in, K, K, K),
    wl: (Cout, R_out, 1, 1, 1), bias: (Cout,)
    returns: (N, Cout, Do, Ho, Wo)
    """
    N, Cin, D, H, W = x_ncdhw.shape
    Rin = w1.shape[0]
    Rout, _, kd, kh, kw = wc.shape
    Cout = wl.shape[0]
    sd, sh, sw = stride
    pd, ph, pw = padding
    dd, dh, dw = dilation

    # Spatial zero-pad in native NCDHW (channels-first kernel => no layout transpose),
    # then flatten spatial dims into the lane axis.
    xp = jnp.pad(x_ncdhw.astype(jnp.float32),
                 ((0, 0), (0, 0), (pd, pd), (ph, ph), (pw, pw)))
    Dp, Hp, Wp = D + 2 * pd, H + 2 * ph, W + 2 * pw
    Mp = Dp * Hp * Wp
    xp3 = xp.reshape(N, Cin, Mp)

    # Stride-1 output geometry inside the kernel (stride handled by wrapper subsample).
    Do1 = Dp - dd * (kd - 1)
    Ho1 = Hp - dh * (kh - 1)
    Wo1 = Wp - dw * (kw - 1)
    Mz = ((Do1 - 1) * Hp + (Ho1 - 1)) * Wp + Wo1   # last valid flat output index + 1

    # Weight prep (tiny, done once in the wrapper).
    w1m = w1.reshape(Rin, Cin).astype(jnp.float32)                       # (Rin, Cin)
    wl2 = wl.reshape(Cout, Rout).astype(jnp.float32)                     # (Cout, Rout)
    # tap-major flattening of the core weight: row index = t*Rin + ri, t=(a*kh+b)*kw+c
    wc_mat = jnp.transpose(wc.astype(jnp.float32), (2, 3, 4, 1, 0)).reshape(
        kd * kh * kw * Rin, Rout)
    # Pre-composed (core @ last):  W2T[co, t*Rin+ri] = sum_ro wl[co,ro]*wc[ro,ri,a,b,c]
    w2T = jnp.dot(wl2, wc_mat.T, precision=jax.lax.Precision.HIGHEST)    # (Cout, K^3*Rin)
    w2T3 = w2T.reshape(Cout, kd * kh * kw, Rin).transpose(1, 0, 2)       # (K^3, Cout, Rin)
    b2 = bias.reshape(Cout, 1).astype(jnp.float32)

    # Lane offsets of the K^3 taps on the flattened (d*Hp + h)*Wp + w index.
    offsets = tuple((a * dd * Hp + b * dh) * Wp + c * dw
                    for a in range(kd) for b in range(kh) for c in range(kw))

    kernel = functools.partial(_tucker_fused_kernel, offsets=offsets, mz=Mz)
    flops = 2 * N * (Mp * Cin * Rin + len(offsets) * Mz * Rin * Cout)
    bytes_accessed = 4 * (N * Cin * Mp + N * Cout * Mz
                          + Rin * Cin + kd * kh * kw * Cout * Rin + Cout)

    z = pl.pallas_call(
        kernel,
        out_shape=jax.ShapeDtypeStruct((N, Cout, Mz), jnp.float32),
        grid=(N,),
        in_specs=[
            pl.BlockSpec((1, Cin, Mp), lambda n: (n, 0, 0)),
            pl.BlockSpec((Rin, Cin), lambda n: (0, 0)),
            pl.BlockSpec((kd * kh * kw, Cout, Rin), lambda n: (0, 0, 0)),
            pl.BlockSpec((Cout, 1), lambda n: (0, 0)),
        ],
        out_specs=pl.BlockSpec((1, Cout, Mz), lambda n: (n, 0, 0)),
        compiler_params=pltpu.CompilerParams(dimension_semantics=("parallel",)),
        cost_estimate=pl.CostEstimate(flops=flops, transcendentals=0,
                                      bytes_accessed=bytes_accessed),
    )(xp3, w1m, w2T3, b2)

    # Unflatten the stride-1 grid and pick the valid / strided output positions.
    Do = (D + 2 * pd - dd * (kd - 1) - 1) // sd + 1
    Ho = (H + 2 * ph - dh * (kh - 1) - 1) // sh + 1
    Wo = (W + 2 * pw - dw * (kw - 1) - 1) // sw + 1
    z = jnp.pad(z, ((0, 0), (0, 0), (0, Do1 * Hp * Wp - Mz)))
    z5 = z.reshape(N, Cout, Do1, Hp, Wp)
    out = z5[:, :,
             0:(Do - 1) * sd + 1:sd,
             0:(Ho - 1) * sh + 1:sh,
             0:(Wo - 1) * sw + 1:sw]
    return out                                                           # already NCDHW


# --------------------------------------------------------------------------
# Pure-JAX reference (XLA conv) for validation
# --------------------------------------------------------------------------

def reference_forward(x, w1, wc, wl, bias, stride, padding, dilation):
    dn = ("NCDHW", "OIDHW", "NCDHW")
    y = jax.lax.conv_general_dilated(x, w1, (1, 1, 1), "VALID", dimension_numbers=dn)
    y = jax.lax.conv_general_dilated(
        y, wc, stride, [(p, p) for p in padding], rhs_dilation=dilation,
        dimension_numbers=dn)
    y = jax.lax.conv_general_dilated(y, wl, (1, 1, 1), "VALID", dimension_numbers=dn)
    return y + bias.reshape(1, -1, 1, 1, 1)


# --------------------------------------------------------------------------
# Main
# --------------------------------------------------------------------------

if __name__ == "__main__":
    # Original Conv3d config the Tucker module wraps.
    N, Cin, Cout = 2, 4, 8
    D = H = W = 8
    kernel_size = (3, 3, 3)
    stride = (1, 1, 1)
    padding = (1, 1, 1)
    dilation = (1, 1, 1)

    # Tucker.get_ranks: rank_mode='relative', rank_factor=1/3, rank_min=None
    rank_factor = 1.0 / 3.0
    Rin = int(math.ceil(Cin * rank_factor))    # tucker_in  = 2
    Rout = int(math.ceil(Cout * rank_factor))  # tucker_out = 3

    key = jax.random.PRNGKey(0)
    k1, k2, k3, k4, kx = jax.random.split(key, 5)
    # Deterministic synthetic weights with the shapes Tucker.__init__ creates
    # (the tensorly partial_tucker SVD only sets numeric values, not semantics).
    w1 = 0.1 * jax.random.normal(k1, (Rin, Cin, 1, 1, 1), dtype=jnp.float32)
    wc = 0.1 * jax.random.normal(k2, (Rout, Rin) + kernel_size, dtype=jnp.float32)
    wl = 0.1 * jax.random.normal(k3, (Cout, Rout, 1, 1, 1), dtype=jnp.float32)
    bias = 0.1 * jax.random.normal(k4, (Cout,), dtype=jnp.float32)

    x = jax.random.normal(kx, (N, Cin, D, H, W), dtype=jnp.float32)

    out = tucker_forward(x, w1, wc, wl, bias,
                         stride=stride, padding=padding, dilation=dilation)
    out = jax.block_until_ready(out)

    ref = reference_forward(x, w1, wc, wl, bias, stride, padding, dilation)
    ref = jax.block_until_ready(ref)

    assert out.shape == ref.shape, (out.shape, ref.shape)
    assert jnp.allclose(out, ref, atol=1e-3, rtol=1e-3), float(jnp.max(jnp.abs(out - ref)))

    print("KERNEL_OK")
</pallas_src>

<mosaic_0001>
module attributes {stable_mosaic.version = 11 : i64} {
  func.func @_tucker_fused_kernel(%arg0: i32, %arg1: memref<1x4x1000xf32, #tpu.memory_space<vmem>>, %arg2: memref<2x4xf32, #tpu.memory_space<vmem>>, %arg3: memref<27x8x2xf32, #tpu.memory_space<vmem>>, %arg4: memref<8x1xf32, #tpu.memory_space<vmem>>, %arg5: memref<1x8x778xf32, #tpu.memory_space<vmem>>) attributes {dimension_semantics = [#tpu.dimension_semantics<parallel>], iteration_bounds = array<i64: 2>, scalar_prefetch = 0 : i64, scratch_operands = 0 : i64, tpu.core_type = #tpu.core_type<tc>, window_params = [{transform_indices = @transform_0, window_bounds = array<i64: 1, 4, 1000>}, {pipeline_mode = #tpu.pipeline_mode<synchronous>, transform_indices = @transform_1, window_bounds = array<i64: 2, 4>}, {pipeline_mode = #tpu.pipeline_mode<synchronous>, transform_indices = @transform_2, window_bounds = array<i64: 27, 8, 2>}, {pipeline_mode = #tpu.pipeline_mode<synchronous>, transform_indices = @transform_3, window_bounds = array<i64: 8, 1>}, {transform_indices = @transform_4, window_bounds = array<i64: 1, 8, 778>}]} {
    %c0 = arith.constant 0 : index
    %c0_0 = arith.constant 0 : index
    %c0_1 = arith.constant 0 : index
    %0 = vector.load %arg1[%c0, %c0_0, %c0_1] : memref<1x4x1000xf32, #tpu.memory_space<vmem>>, vector<1x4x1000xf32>
    %1 = vector.shape_cast %0 : vector<1x4x1000xf32> to vector<4x1000xf32>
    %c0_2 = arith.constant 0 : index
    %c0_3 = arith.constant 0 : index
    %2 = vector.load %arg2[%c0_2, %c0_3] : memref<2x4xf32, #tpu.memory_space<vmem>>, vector<2x4xf32>
    %cst = arith.constant dense<0.000000e+00> : vector<2x1000xf32>
    %3 = tpu.matmul %2, %1, %cst {dimension_numbers = #tpu.dot_dimension_numbers<[1], [0], [0], [1], [0, 0, 1, 1], [], []>} : vector<2x4xf32>, vector<4x1000xf32>, vector<2x1000xf32> -> vector<2x1000xf32>
    %cst_4 = arith.constant 0.000000e+00 : f32
    %4 = vector.broadcast %cst_4 : f32 to vector<8x778xf32>
    %c0_5 = arith.constant 0 : index
    %c0_6 = arith.constant 0 : index
    %c0_7 = arith.constant 0 : index
    %5 = vector.load %arg3[%c0_5, %c0_6, %c0_7] : memref<27x8x2xf32, #tpu.memory_space<vmem>>, vector<1x8x2xf32>
    %6 = vector.shape_cast %5 : vector<1x8x2xf32> to vector<8x2xf32>
    %7 = vector.extract_strided_slice %3 {offsets = [0, 0], sizes = [2, 778], strides = [1, 1]} : vector<2x1000xf32> to vector<2x778xf32>
    %cst_8 = arith.constant dense<0.000000e+00> : vector<8x778xf32>
    %8 = tpu.matmul %6, %7, %cst_8 {dimension_numbers = #tpu.dot_dimension_numbers<[1], [0], [0], [1], [0, 0, 1, 1], [], []>} : vector<8x2xf32>, vector<2x778xf32>, vector<8x778xf32> -> vector<8x778xf32>
    %9 = arith.addf %4, %8 : vector<8x778xf32>
    %c1 = arith.constant 1 : index
    %c0_9 = arith.constant 0 : index
    %c0_10 = arith.constant 0 : index
    %10 = vector.load %arg3[%c1, %c0_9, %c0_10] : memref<27x8x2xf32, #tpu.memory_space<vmem>>, vector<1x8x2xf32>
    %11 = vector.shape_cast %10 : vector<1x8x2xf32> to vector<8x2xf32>
    %12 = vector.extract_strided_slice %3 {offsets = [0, 1], sizes = [2, 778], strides = [1, 1]} : vector<2x1000xf32> to vector<2x778xf32>
    %cst_11 = arith.constant dense<0.000000e+00> : vector<8x778xf32>
    %13 = tpu.matmul %11, %12, %cst_11 {dimension_numbers = #tpu.dot_dimension_numbers<[1], [0], [0], [1], [0, 0, 1, 1], [], []>} : vector<8x2xf32>, vector<2x778xf32>, vector<8x778xf32> -> vector<8x778xf32>
    %14 = arith.addf %9, %13 : vector<8x778xf32>
    %c2 = arith.constant 2 : index
    %c0_12 = arith.constant 0 : index
    %c0_13 = arith.constant 0 : index
    %15 = vector.load %arg3[%c2, %c0_12, %c0_13] : memref<27x8x2xf32, #tpu.memory_space<vmem>>, vector<1x8x2xf32>
    %16 = vector.shape_cast %15 : vector<1x8x2xf32> to vector<8x2xf32>
    %17 = vector.extract_strided_slice %3 {offsets = [0, 2], sizes = [2, 778], strides = [1, 1]} : vector<2x1000xf32> to vector<2x778xf32>
    %cst_14 = arith.constant dense<0.000000e+00> : vector<8x778xf32>
    %18 = tpu.matmul %16, %17, %cst_14 {dimension_numbers = #tpu.dot_dimension_numbers<[1], [0], [0], [1], [0, 0, 1, 1], [], []>} : vector<8x2xf32>, vector<2x778xf32>, vector<8x778xf32> -> vector<8x778xf32>
    %19 = arith.addf %14, %18 : vector<8x778xf32>
    %c3 = arith.constant 3 : index
    %c0_15 = arith.constant 0 : index
    %c0_16 = arith.constant 0 : index
    %20 = vector.load %arg3[%c3, %c0_15, %c0_16] : memref<27x8x2xf32, #tpu.memory_space<vmem>>, vector<1x8x2xf32>
    %21 = vector.shape_cast %20 : vector<1x8x2xf32> to vector<8x2xf32>
    %22 = vector.extract_strided_slice %3 {offsets = [0, 10], sizes = [2, 778], strides = [1, 1]} : vector<2x1000xf32> to vector<2x778xf32>
    %cst_17 = arith.constant dense<0.000000e+00> : vector<8x778xf32>
    %23 = tpu.matmul %21, %22, %cst_17 {dimension_numbers = #tpu.dot_dimension_numbers<[1], [0], [0], [1], [0, 0, 1, 1], [], []>} : vector<8x2xf32>, vector<2x778xf32>, vector<8x778xf32> -> vector<8x778xf32>
    %24 = arith.addf %19, %23 : vector<8x778xf32>
    %c4 = arith.constant 4 : index
    %c0_18 = arith.constant 0 : index
    %c0_19 = arith.constant 0 : index
    %25 = vector.load %arg3[%c4, %c0_18, %c0_19] : memref<27x8x2xf32, #tpu.memory_space<vmem>>, vector<1x8x2xf32>
    %26 = vector.shape_cast %25 : vector<1x8x2xf32> to vector<8x2xf32>
    %27 = vector.extract_strided_slice %3 {offsets = [0, 11], sizes = [2, 778], strides = [1, 1]} : vector<2x1000xf32> to vector<2x778xf32>
    %cst_20 = arith.constant dense<0.000000e+00> : vector<8x778xf32>
    %28 = tpu.matmul %26, %27, %cst_20 {dimension_numbers = #tpu.dot_dimension_numbers<[1], [0], [0], [1], [0, 0, 1, 1], [], []>} : vector<8x2xf32>, vector<2x778xf32>, vector<8x778xf32> -> vector<8x778xf32>
    %29 = arith.addf %24, %28 : vector<8x778xf32>
    %c5 = arith.constant 5 : index
    %c0_21 = arith.constant 0 : index
    %c0_22 = arith.constant 0 : index
    %30 = vector.load %arg3[%c5, %c0_21, %c0_22] : memref<27x8x2xf32, #tpu.memory_space<vmem>>, vector<1x8x2xf32>
    %31 = vector.shape_cast %30 : vector<1x8x2xf32> to vector<8x2xf32>
    %32 = vector.extract_strided_slice %3 {offsets = [0, 12], sizes = [2, 778], strides = [1, 1]} : vector<2x1000xf32> to vector<2x778xf32>
    %cst_23 = arith.constant dense<0.000000e+00> : vector<8x778xf32>
    %33 = tpu.matmul %31, %32, %cst_23 {dimension_numbers = #tpu.dot_dimension_numbers<[1], [0], [0], [1], [0, 0, 1, 1], [], []>} : vector<8x2xf32>, vector<2x778xf32>, vector<8x778xf32> -> vector<8x778xf32>
    %34 = arith.addf %29, %33 : vector<8x778xf32>
    %c6 = arith.constant 6 : index
    %c0_24 = arith.constant 0 : index
    %c0_25 = arith.constant 0 : index
    %35 = vector.load %arg3[%c6, %c0_24, %c0_25] : memref<27x8x2xf32, #tpu.memory_space<vmem>>, vector<1x8x2xf32>
    %36 = vector.shape_cast %35 : vector<1x8x2xf32> to vector<8x2xf32>
    %37 = vector.extract_strided_slice %3 {offsets = [0, 20], sizes = [2, 778], strides = [1, 1]} : vector<2x1000xf32> to vector<2x778xf32>
    %cst_26 = arith.constant dense<0.000000e+00> : vector<8x778xf32>
    %38 = tpu.matmul %36, %37, %cst_26 {dimension_numbers = #tpu.dot_dimension_numbers<[1], [0], [0], [1], [0, 0, 1, 1], [], []>} : vector<8x2xf32>, vector<2x778xf32>, vector<8x778xf32> -> vector<8x778xf32>
    %39 = arith.addf %34, %38 : vector<8x778xf32>
    %c7 = arith.constant 7 : index
    %c0_27 = arith.constant 0 : index
    %c0_28 = arith.constant 0 : index
    %40 = vector.load %arg3[%c7, %c0_27, %c0_28] : memref<27x8x2xf32, #tpu.memory_space<vmem>>, vector<1x8x2xf32>
    %41 = vector.shape_cast %40 : vector<1x8x2xf32> to vector<8x2xf32>
    %42 = vector.extract_strided_slice %3 {offsets = [0, 21], sizes = [2, 778], strides = [1, 1]} : vector<2x1000xf32> to vector<2x778xf32>
    %cst_29 = arith.constant dense<0.000000e+00> : vector<8x778xf32>
    %43 = tpu.matmul %41, %42, %cst_29 {dimension_numbers = #tpu.dot_dimension_numbers<[1], [0], [0], [1], [0, 0, 1, 1], [], []>} : vector<8x2xf32>, vector<2x778xf32>, vector<8x778xf32> -> vector<8x778xf32>
    %44 = arith.addf %39, %43 : vector<8x778xf32>
    %c8 = arith.constant 8 : index
    %c0_30 = arith.constant 0 : index
    %c0_31 = arith.constant 0 : index
    %45 = vector.load %arg3[%c8, %c0_30, %c0_31] : memref<27x8x2xf32, #tpu.memory_space<vmem>>, vector<1x8x2xf32>
    %46 = vector.shape_cast %45 : vector<1x8x2xf32> to vector<8x2xf32>
    %47 = vector.extract_strided_slice %3 {offsets = [0, 22], sizes = [2, 778], strides = [1, 1]} : vector<2x1000xf32> to vector<2x778xf32>
    %cst_32 = arith.constant dense<0.000000e+00> : vector<8x778xf32>
    %48 = tpu.matmul %46, %47, %cst_32 {dimension_numbers = #tpu.dot_dimension_numbers<[1], [0], [0], [1], [0, 0, 1, 1], [], []>} : vector<8x2xf32>, vector<2x778xf32>, vector<8x778xf32> -> vector<8x778xf32>
    %49 = arith.addf %44, %48 : vector<8x778xf32>
    %c9 = arith.constant 9 : index
    %c0_33 = arith.constant 0 : index
    %c0_34 = arith.constant 0 : index
    %50 = vector.load %arg3[%c9, %c0_33, %c0_34] : memref<27x8x2xf32, #tpu.memory_space<vmem>>, vector<1x8x2xf32>
    %51 = vector.shape_cast %50 : vector<1x8x2xf32> to vector<8x2xf32>
    %52 = vector.extract_strided_slice %3 {offsets = [0, 100], sizes = [2, 778], strides = [1, 1]} : vector<2x1000xf32> to vector<2x778xf32>
    %cst_35 = arith.constant dense<0.000000e+00> : vector<8x778xf32>
    %53 = tpu.matmul %51, %52, %cst_35 {dimension_numbers = #tpu.dot_dimension_numbers<[1], [0], [0], [1], [0, 0, 1, 1], [], []>} : vector<8x2xf32>, vector<2x778xf32>, vector<8x778xf32> -> vector<8x778xf32>
    %54 = arith.addf %49, %53 : vector<8x778xf32>
    %c10 = arith.constant 10 : index
    %c0_36 = arith.constant 0 : index
    %c0_37 = arith.constant 0 : index
    %55 = vector.load %arg3[%c10, %c0_36, %c0_37] : memref<27x8x2xf32, #tpu.memory_space<vmem>>, vector<1x8x2xf32>
    %56 = vector.shape_cast %55 : vector<1x8x2xf32> to vector<8x2xf32>
    %57 = vector.extract_strided_slice %3 {offsets = [0, 101], sizes = [2, 778], strides = [1, 1]} : vector<2x1000xf32> to vector<2x778xf32>
    %cst_38 = arith.constant dense<0.000000e+00> : vector<8x778xf32>
    %58 = tpu.matmul %56, %57, %cst_38 {dimension_numbers = #tpu.dot_dimension_numbers<[1], [0], [0], [1], [0, 0, 1, 1], [], []>} : vector<8x2xf32>, vector<2x778xf32>, vector<8x778xf32> -> vector<8x778xf32>
    %59 = arith.addf %54, %58 : vector<8x778xf32>
    %c11 = arith.constant 11 : index
    %c0_39 = arith.constant 0 : index
    %c0_40 = arith.constant 0 : index
    %60 = vector.load %arg3[%c11, %c0_39, %c0_40] : memref<27x8x2xf32, #tpu.memory_space<vmem>>, vector<1x8x2xf32>
    %61 = vector.shape_cast %60 : vector<1x8x2xf32> to vector<8x2xf32>
    %62 = vector.extract_strided_slice %3 {offsets = [0, 102], sizes = [2, 778], strides = [1, 1]} : vector<2x1000xf32> to vector<2x778xf32>
    %cst_41 = arith.constant dense<0.000000e+00> : vector<8x778xf32>
    %63 = tpu.matmul %61, %62, %cst_41 {dimension_numbers = #tpu.dot_dimension_numbers<[1], [0], [0], [1], [0, 0, 1, 1], [], []>} : vector<8x2xf32>, vector<2x778xf32>, vector<8x778xf32> -> vector<8x778xf32>
    %64 = arith.addf %59, %63 : vector<8x778xf32>
    %c12 = arith.constant 12 : index
    %c0_42 = arith.constant 0 : index
    %c0_43 = arith.constant 0 : index
    %65 = vector.load %arg3[%c12, %c0_42, %c0_43] : memref<27x8x2xf32, #tpu.memory_space<vmem>>, vector<1x8x2xf32>
    %66 = vector.shape_cast %65 : vector<1x8x2xf32> to vector<8x2xf32>
    %67 = vector.extract_strided_slice %3 {offsets = [0, 110], sizes = [2, 778], strides = [1, 1]} : vector<2x1000xf32> to vector<2x778xf32>
    %cst_44 = arith.constant dense<0.000000e+00> : vector<8x778xf32>
    %68 = tpu.matmul %66, %67, %cst_44 {dimension_numbers = #tpu.dot_dimension_numbers<[1], [0], [0], [1], [0, 0, 1, 1], [], []>} : vector<8x2xf32>, vector<2x778xf32>, vector<8x778xf32> -> vector<8x778xf32>
    %69 = arith.addf %64, %68 : vector<8x778xf32>
    %c13 = arith.constant 13 : index
    %c0_45 = arith.constant 0 : index
    %c0_46 = arith.constant 0 : index
    %70 = vector.load %arg3[%c13, %c0_45, %c0_46] : memref<27x8x2xf32, #tpu.memory_space<vmem>>, vector<1x8x2xf32>
    %71 = vector.shape_cast %70 : vector<1x8x2xf32> to vector<8x2xf32>
    %72 = vector.extract_strided_slice %3 {offsets = [0, 111], sizes = [2, 778], strides = [1, 1]} : vector<2x1000xf32> to vector<2x778xf32>
    %cst_47 = arith.constant dense<0.000000e+00> : vector<8x778xf32>
    %73 = tpu.matmul %71, %72, %cst_47 {dimension_numbers = #tpu.dot_dimension_numbers<[1], [0], [0], [1], [0, 0, 1, 1], [], []>} : vector<8x2xf32>, vector<2x778xf32>, vector<8x778xf32> -> vector<8x778xf32>
    %74 = arith.addf %69, %73 : vector<8x778xf32>
    %c14 = arith.constant 14 : index
    %c0_48 = arith.constant 0 : index
    %c0_49 = arith.constant 0 : index
    %75 = vector.load %arg3[%c14, %c0_48, %c0_49] : memref<27x8x2xf32, #tpu.memory_space<vmem>>, vector<1x8x2xf32>
    %76 = vector.shape_cast %75 : vector<1x8x2xf32> to vector<8x2xf32>
    %77 = vector.extract_strided_slice %3 {offsets = [0, 112], sizes = [2, 778], strides = [1, 1]} : vector<2x1000xf32> to vector<2x778xf32>
    %cst_50 = arith.constant dense<0.000000e+00> : vector<8x778xf32>
    %78 = tpu.matmul %76, %77, %cst_50 {dimension_numbers = #tpu.dot_dimension_numbers<[1], [0], [0], [1], [0, 0, 1, 1], [], []>} : vector<8x2xf32>, vector<2x778xf32>, vector<8x778xf32> -> vector<8x778xf32>
    %79 = arith.addf %74, %78 : vector<8x778xf32>
    %c15 = arith.constant 15 : index
    %c0_51 = arith.constant 0 : index
    %c0_52 = arith.constant 0 : index
    %80 = vector.load %arg3[%c15, %c0_51, %c0_52] : memref<27x8x2xf32, #tpu.memory_space<vmem>>, vector<1x8x2xf32>
    %81 = vector.shape_cast %80 : vector<1x8x2xf32> to vector<8x2xf32>
    %82 = vector.extract_strided_slice %3 {offsets = [0, 120], sizes = [2, 778], strides = [1, 1]} : vector<2x1000xf32> to vector<2x778xf32>
    %cst_53 = arith.constant dense<0.000000e+00> : vector<8x778xf32>
    %83 = tpu.matmul %81, %82, %cst_53 {dimension_numbers = #tpu.dot_dimension_numbers<[1], [0], [0], [1], [0, 0, 1, 1], [], []>} : vector<8x2xf32>, vector<2x778xf32>, vector<8x778xf32> -> vector<8x778xf32>
    %84 = arith.addf %79, %83 : vector<8x778xf32>
    %c16 = arith.constant 16 : index
    %c0_54 = arith.constant 0 : index
    %c0_55 = arith.constant 0 : index
    %85 = vector.load %arg3[%c16, %c0_54, %c0_55] : memref<27x8x2xf32, #tpu.memory_space<vmem>>, vector<1x8x2xf32>
    %86 = vector.shape_cast %85 : vector<1x8x2xf32> to vector<8x2xf32>
    %87 = vector.extract_strided_slice %3 {offsets = [0, 121], sizes = [2, 778], strides = [1, 1]} : vector<2x1000xf32> to vector<2x778xf32>
    %cst_56 = arith.constant dense<0.000000e+00> : vector<8x778xf32>
    %88 = tpu.matmul %86, %87, %cst_56 {dimension_numbers = #tpu.dot_dimension_numbers<[1], [0], [0], [1], [0, 0, 1, 1], [], []>} : vector<8x2xf32>, vector<2x778xf32>, vector<8x778xf32> -> vector<8x778xf32>
    %89 = arith.addf %84, %88 : vector<8x778xf32>
    %c17 = arith.constant 17 : index
    %c0_57 = arith.constant 0 : index
    %c0_58 = arith.constant 0 : index
    %90 = vector.load %arg3[%c17, %c0_57, %c0_58] : memref<27x8x2xf32, #tpu.memory_space<vmem>>, vector<1x8x2xf32>
    %91 = vector.shape_cast %90 : vector<1x8x2xf32> to vector<8x2xf32>
    %92 = vector.extract_strided_slice %3 {offsets = [0, 122], sizes = [2, 778], strides = [1, 1]} : vector<2x1000xf32> to vector<2x778xf32>
    %cst_59 = arith.constant dense<0.000000e+00> : vector<8x778xf32>
    %93 = tpu.matmul %91, %92, %cst_59 {dimension_numbers = #tpu.dot_dimension_numbers<[1], [0], [0], [1], [0, 0, 1, 1], [], []>} : vector<8x2xf32>, vector<2x778xf32>, vector<8x778xf32> -> vector<8x778xf32>
    %94 = arith.addf %89, %93 : vector<8x778xf32>
    %c18 = arith.constant 18 : index
    %c0_60 = arith.constant 0 : index
    %c0_61 = arith.constant 0 : index
    %95 = vector.load %arg3[%c18, %c0_60, %c0_61] : memref<27x8x2xf32, #tpu.memory_space<vmem>>, vector<1x8x2xf32>
    %96 = vector.shape_cast %95 : vector<1x8x2xf32> to vector<8x2xf32>
    %97 = vector.extract_strided_slice %3 {offsets = [0, 200], sizes = [2, 778], strides = [1, 1]} : vector<2x1000xf32> to vector<2x778xf32>
    %cst_62 = arith.constant dense<0.000000e+00> : vector<8x778xf32>
    %98 = tpu.matmul %96, %97, %cst_62 {dimension_numbers = #tpu.dot_dimension_numbers<[1], [0], [0], [1], [0, 0, 1, 1], [], []>} : vector<8x2xf32>, vector<2x778xf32>, vector<8x778xf32> -> vector<8x778xf32>
    %99 = arith.addf %94, %98 : vector<8x778xf32>
    %c19 = arith.constant 19 : index
    %c0_63 = arith.constant 0 : index
    %c0_64 = arith.constant 0 : index
    %100 = vector.load %arg3[%c19, %c0_63, %c0_64] : memref<27x8x2xf32, #tpu.memory_space<vmem>>, vector<1x8x2xf32>
    %101 = vector.shape_cast %100 : vector<1x8x2xf32> to vector<8x2xf32>
    %102 = vector.extract_strided_slice %3 {offsets = [0, 201], sizes = [2, 778], strides = [1, 1]} : vector<2x1000xf32> to vector<2x778xf32>
    %cst_65 = arith.constant dense<0.000000e+00> : vector<8x778xf32>
    %103 = tpu.matmul %101, %102, %cst_65 {dimension_numbers = #tpu.dot_dimension_numbers<[1], [0], [0], [1], [0, 0, 1, 1], [], []>} : vector<8x2xf32>, vector<2x778xf32>, vector<8x778xf32> -> vector<8x778xf32>
    %104 = arith.addf %99, %103 : vector<8x778xf32>
    %c20 = arith.constant 20 : index
    %c0_66 = arith.constant 0 : index
    %c0_67 = arith.constant 0 : index
    %105 = vector.load %arg3[%c20, %c0_66, %c0_67] : memref<27x8x2xf32, #tpu.memory_space<vmem>>, vector<1x8x2xf32>
    %106 = vector.shape_cast %105 : vector<1x8x2xf32> to vector<8x2xf32>
    %107 = vector.extract_strided_slice %3 {offsets = [0, 202], sizes = [2, 778], strides = [1, 1]} : vector<2x1000xf32> to vector<2x778xf32>
    %cst_68 = arith.constant dense<0.000000e+00> : vector<8x778xf32>
    %108 = tpu.matmul %106, %107, %cst_68 {dimension_numbers = #tpu.dot_dimension_numbers<[1], [0], [0], [1], [0, 0, 1, 1], [], []>} : vector<8x2xf32>, vector<2x778xf32>, vector<8x778xf32> -> vector<8x778xf32>
    %109 = arith.addf %104, %108 : vector<8x778xf32>
    %c21 = arith.constant 21 : index
    %c0_69 = arith.constant 0 : index
    %c0_70 = arith.constant 0 : index
    %110 = vector.load %arg3[%c21, %c0_69, %c0_70] : memref<27x8x2xf32, #tpu.memory_space<vmem>>, vector<1x8x2xf32>
    %111 = vector.shape_cast %110 : vector<1x8x2xf32> to vector<8x2xf32>
    %112 = vector.extract_strided_slice %3 {offsets = [0, 210], sizes = [2, 778], strides = [1, 1]} : vector<2x1000xf32> to vector<2x778xf32>
    %cst_71 = arith.constant dense<0.000000e+00> : vector<8x778xf32>
    %113 = tpu.matmul %111, %112, %cst_71 {dimension_numbers = #tpu.dot_dimension_numbers<[1], [0], [0], [1], [0, 0, 1, 1], [], []>} : vector<8x2xf32>, vector<2x778xf32>, vector<8x778xf32> -> vector<8x778xf32>
    %114 = arith.addf %109, %113 : vector<8x778xf32>
    %c22 = arith.constant 22 : index
    %c0_72 = arith.constant 0 : index
    %c0_73 = arith.constant 0 : index
    %115 = vector.load %arg3[%c22, %c0_72, %c0_73] : memref<27x8x2xf32, #tpu.memory_space<vmem>>, vector<1x8x2xf32>
    %116 = vector.shape_cast %115 : vector<1x8x2xf32> to vector<8x2xf32>
    %117 = vector.extract_strided_slice %3 {offsets = [0, 211], sizes = [2, 778], strides = [1, 1]} : vector<2x1000xf32> to vector<2x778xf32>
    %cst_74 = arith.constant dense<0.000000e+00> : vector<8x778xf32>
    %118 = tpu.matmul %116, %117, %cst_74 {dimension_numbers = #tpu.dot_dimension_numbers<[1], [0], [0], [1], [0, 0, 1, 1], [], []>} : vector<8x2xf32>, vector<2x778xf32>, vector<8x778xf32> -> vector<8x778xf32>
    %119 = arith.addf %114, %118 : vector<8x778xf32>
    %c23 = arith.constant 23 : index
    %c0_75 = arith.constant 0 : index
    %c0_76 = arith.constant 0 : index
    %120 = vector.load %arg3[%c23, %c0_75, %c0_76] : memref<27x8x2xf32, #tpu.memory_space<vmem>>, vector<1x8x2xf32>
    %121 = vector.shape_cast %120 : vector<1x8x2xf32> to vector<8x2xf32>
    %122 = vector.extract_strided_slice %3 {offsets = [0, 212], sizes = [2, 778], strides = [1, 1]} : vector<2x1000xf32> to vector<2x778xf32>
    %cst_77 = arith.constant dense<0.000000e+00> : vector<8x778xf32>
    %123 = tpu.matmul %121, %122, %cst_77 {dimension_numbers = #tpu.dot_dimension_numbers<[1], [0], [0], [1], [0, 0, 1, 1], [], []>} : vector<8x2xf32>, vector<2x778xf32>, vector<8x778xf32> -> vector<8x778xf32>
    %124 = arith.addf %119, %123 : vector<8x778xf32>
    %c24 = arith.constant 24 : index
    %c0_78 = arith.constant 0 : index
    %c0_79 = arith.constant 0 : index
    %125 = vector.load %arg3[%c24, %c0_78, %c0_79] : memref<27x8x2xf32, #tpu.memory_space<vmem>>, vector<1x8x2xf32>
    %126 = vector.shape_cast %125 : vector<1x8x2xf32> to vector<8x2xf32>
    %127 = vector.extract_strided_slice %3 {offsets = [0, 220], sizes = [2, 778], strides = [1, 1]} : vector<2x1000xf32> to vector<2x778xf32>
    %cst_80 = arith.constant dense<0.000000e+00> : vector<8x778xf32>
    %128 = tpu.matmul %126, %127, %cst_80 {dimension_numbers = #tpu.dot_dimension_numbers<[1], [0], [0], [1], [0, 0, 1, 1], [], []>} : vector<8x2xf32>, vector<2x778xf32>, vector<8x778xf32> -> vector<8x778xf32>
    %129 = arith.addf %124, %128 : vector<8x778xf32>
    %c25 = arith.constant 25 : index
    %c0_81 = arith.constant 0 : index
    %c0_82 = arith.constant 0 : index
    %130 = vector.load %arg3[%c25, %c0_81, %c0_82] : memref<27x8x2xf32, #tpu.memory_space<vmem>>, vector<1x8x2xf32>
    %131 = vector.shape_cast %130 : vector<1x8x2xf32> to vector<8x2xf32>
    %132 = vector.extract_strided_slice %3 {offsets = [0, 221], sizes = [2, 778], strides = [1, 1]} : vector<2x1000xf32> to vector<2x778xf32>
    %cst_83 = arith.constant dense<0.000000e+00> : vector<8x778xf32>
    %133 = tpu.matmul %131, %132, %cst_83 {dimension_numbers = #tpu.dot_dimension_numbers<[1], [0], [0], [1], [0, 0, 1, 1], [], []>} : vector<8x2xf32>, vector<2x778xf32>, vector<8x778xf32> -> vector<8x778xf32>
    %134 = arith.addf %129, %133 : vector<8x778xf32>
    %c26 = arith.constant 26 : index
    %c0_84 = arith.constant 0 : index
    %c0_85 = arith.constant 0 : index
    %135 = vector.load %arg3[%c26, %c0_84, %c0_85] : memref<27x8x2xf32, #tpu.memory_space<vmem>>, vector<1x8x2xf32>
    %136 = vector.shape_cast %135 : vector<1x8x2xf32> to vector<8x2xf32>
    %137 = vector.extract_strided_slice %3 {offsets = [0, 222], sizes = [2, 778], strides = [1, 1]} : vector<2x1000xf32> to vector<2x778xf32>
    %cst_86 = arith.constant dense<0.000000e+00> : vector<8x778xf32>
    %138 = tpu.matmul %136, %137, %cst_86 {dimension_numbers = #tpu.dot_dimension_numbers<[1], [0], [0], [1], [0, 0, 1, 1], [], []>} : vector<8x2xf32>, vector<2x778xf32>, vector<8x778xf32> -> vector<8x778xf32>
    %139 = arith.addf %134, %138 : vector<8x778xf32>
    %c0_87 = arith.constant 0 : index
    %c0_88 = arith.constant 0 : index
    %140 = vector.load %arg4[%c0_87, %c0_88] : memref<8x1xf32, #tpu.memory_space<vmem>>, vector<8x1xf32>
    %141 = vector.broadcast %140 : vector<8x1xf32> to vector<8x778xf32>
    %142 = arith.addf %139, %141 : vector<8x778xf32>
    %c0_89 = arith.constant 0 : index
    %c0_90 = arith.constant 0 : index
    %c0_91 = arith.constant 0 : index
    %143 = vector.load %arg5[%c0_89, %c0_90, %c0_91] : memref<1x8x778xf32, #tpu.memory_space<vmem>>, vector<1x8x778xf32>
    %144 = vector.shape_cast %143 : vector<1x8x778xf32> to vector<8x778xf32>
    %145 = vector.shape_cast %142 : vector<8x778xf32> to vector<1x8x778xf32>
    tpu.vector_store %arg5[%c0_89, %c0_90, %c0_91], %145 {strides = array<i32>} : memref<1x8x778xf32, #tpu.memory_space<vmem>>, vector<1x8x778xf32>,
    return
  }
  func.func @transform_0(%arg0: i32) -> (i32, i32, i32) {
    %c0_i32 = arith.constant 0 : i32
    %c0_i32_0 = arith.constant 0 : i32
    %c0_i32_1 = arith.constant 0 : i32
    return %arg0, %c0_i32, %c0_i32_0 : i32, i32, i32
  }
  func.func @transform_1(%arg0: i32) -> (i32, i32) {
    %c0_i32 = arith.constant 0 : i32
    %c0_i32_0 = arith.constant 0 : i32
    %c0_i32_1 = arith.constant 0 : i32
    return %c0_i32, %c0_i32_0 : i32, i32
  }
  func.func @transform_2(%arg0: i32) -> (i32, i32, i32) {
    %c0_i32 = arith.constant 0 : i32
    %c0_i32_0 = arith.constant 0 : i32
    %c0_i32_1 = arith.constant 0 : i32
    %c0_i32_2 = arith.constant 0 : i32
    return %c0_i32, %c0_i32_0, %c0_i32_1 : i32, i32, i32
  }
  func.func @transform_3(%arg0: i32) -> (i32, i32) {
    %c0_i32 = arith.constant 0 : i32
    %c0_i32_0 = arith.constant 0 : i32
    %c0_i32_1 = arith.constant 0 : i32
    return %c0_i32, %c0_i32_0 : i32, i32
  }
  func.func @transform_4(%arg0: i32) -> (i32, i32, i32) {
    %c0_i32 = arith.constant 0 : i32
    %c0_i32_0 = arith.constant 0 : i32
    %c0_i32_1 = arith.constant 0 : i32
    return %arg0, %c0_i32, %c0_i32_0 : i32, i32, i32
  }
}

</mosaic_0001>

<bundles_post_ra>
// kernel: tucker_forward.1
= control target key start
LH: loop header
LB: loop body
LE: loop exit
PB: predicated region body
PF: predicated region fallthrough
CT: control target
= control target key end

     0   :  { %s6040_s15 = smov 0   ;;  %s7955_s0 = inlined_call_operand.vmem [shape: f32[2,4,1000], index: 0, kind: input, shape index: {}]   ;;  %s7956_s1 = inlined_call_operand.vmem [shape: f32[2,4], index: 1, kind: input, shape index: {}]   ;;  %s7957_s2 = inlined_call_operand.vmem [shape: f32[27,8,2], index: 2, kind: input, shape index: {}]   ;;  %s7958_s3 = inlined_call_operand.vmem [shape: f32[8,1], index: 3, kind: input, shape index: {}]   ;;  %s7959_s4 = inlined_call_operand.vmem [shape: f32[2,8,778], index: 4, kind: output, shape index: {}]  }
   0x1 LB: > { %s5511_s16 = sadd.s32 4294967295, %s5986_s15   ;;  %p5515_p0 = scmp.ge.s32.totalorder %s5986_s15, 1  ;;  %s5986_s15 = sphi %s6040_s15, %s14_s15  }
   0x2   : > { %p162_p1 = scmp.lt.s32.totalorder %s5986_s15, 3 }
   0x4   : > { %p163_p2 = pnand %p5515_p0, %p162_p1 }
   0x5   : > { %p188_p3 = scmp.lt.s32.totalorder (!%p163_p2), %s5511_s16, 1  ;;  %s5988_s23 = smov (!%p163_p2), 126  }
   0x6   : > { %166 = sbr.rel (%p163_p2) target bundleno = 895 (0x37f), region = 36  ;;  %s5989_s24 = smov (!%p163_p2), 127  }
   0x7   : > { %s5990_s25 = smov (!%p163_p2), 118   ;;  %s5991_s26 = smov (!%p163_p2), 117  }
   0x8   : > { %s5992_s27 = smov (!%p163_p2), 108   ;;  %s5993_s28 = smov (!%p163_p2), 116  }
   0x9   : > { %s5994_s29 = smov (!%p163_p2), 106   ;;  %s5995_s30 = smov (!%p163_p2), 107  }
   0xa   : > { %s5996_s5 = smov (!%p163_p2), 28   ;;  %s5997_s10 = smov (!%p163_p2), 27  }
   0xb   : > { %s7961_s16 = smov (!%p188_p3, %s5511_s16), 1  ;;  %vm226_vm0 = vcmask 1043456   ;;  %v6057_v4 = vld [vmem:[%s7956_s1] sm:$0x3]  ;;  %vm222_vm1 = vcmask 31744   ;;  %vm427_vm2 = vcmask 1039360  }
   0xc   : > { %s5941_s17 = sshll.u32 %s7961_s16, 5  ;;  %vm438_vm3 = vcmask 1041408   ;;  %v6210_v29 = vld [vmem:[%s7957_s2 + $0x8] sm:$0xff]  ;;  %vm434_vm4 = vcmask 15360   ;;  %v6291_v50 = vld [vmem:[%s7957_s2] sm:$0xff]  ;;  %vm766_vm5 = vcmask 1031168  }
   0xd   : > { %s192_s20 = scalar_lea.vmem %s7955_s0, %s5941_s17  ;;  %s5998_s11 = smov 26   ;;  %vm1701_vm6 = vcmask 875520   ;;  %vm1514_vm7 = vcmask 883712   ;;  %vm2075_vm8 = vcmask 228352   ;;  %vm1888_vm9 = vcmask 867328  }
   0xe   : > { %v198_v0 = vld [vmem:[%s192_s20] sm:$0xff]  ;;  %v199_v1 = vld [vmem:[%s192_s20 + $0x8] sm:$0xff]  ;;  %v200_v2 = vld [vmem:[%s192_s20 + $0x10] sm:$0xff]  ;;  %s5999_s12 = smov 18   ;;  %s6000_s17 = smov 17   ;;  %vm953_vm10 = vcmask 965632  }
   0xf   : > { %207 = vst [vmem:[#allocation1] ss:$2 sm:$0xff] %v198_v0  ;;  %v201_v3 = vld [vmem:[%s192_s20 + $0x18] sm:$0xff]  ;;  %s6001_s18 = smov 16   ;;  %s6002_s19 = smov 8   ;;  %vm1140_vm11 = vcmask 957440  }
  0x10   : > { %209 = vst [vmem:[#allocation1 + $0x10] ss:$2 sm:$0xff] %v199_v1  ;;  %vm1327_vm12 = vcmask 949248   ;;  %vm2262_vm13 = vcmask 220160   ;;  %vm2449_vm14 = vcmask 211968   ;;  %vm2636_vm15 = vcmask 146432  }
  0x11   : > { %211 = vst [vmem:[#allocation1 + $0x20] ss:$2 sm:$0xff] %v200_v2  ;;  %s6006_s9 = smov 55   ;;  %s6009_s22 = smov 45  }
  0x12   : > { %213 = vst [vmem:[#allocation1 + $0x30] ss:$2 sm:$0xff] %v201_v3  ;;  %s6012_s7 = smov 35  }
  0x16   : > { %v214_v5 = vld.sshfl [vmem:[#allocation1] sm:$0xff pattern:$0x75316420]  ;;  %v215_v6 = vld.sshfl [vmem:[#allocation1 + $0x8] sm:$0xff pattern:$0x75316420] }
  0x17   : > { %5519 = vmatpush.msk.msra.mxu0 %vm226_vm0, %v214_v5  ;;  %5521 = vmatpush.msk.msra.mxu1 %vm226_vm0, %v215_v6  ;;  %v216_v7 = vld.sshfl [vmem:[#allocation1 + $0x10] sm:$0xff pattern:$0x75316420]  ;;  %v217_v8 = vld.sshfl [vmem:[#allocation1 + $0x18] sm:$0xff pattern:$0x75316420] }
  0x18   : > { %5520 = vmatmul.msk.f32.vlgmr.msra.gmra.mxu0 %vm222_vm1, %v6057_v4  ;;  %5522 = vmatmul.msk.f32.vlgmr.msra.gmra.mxu1 %vm222_vm1, %v6057_v4  ;;  %v218_v9 = vld.sshfl [vmem:[#allocation1 + $0x20] sm:$0xff pattern:$0x75316420]  ;;  %v219_v10 = vld.sshfl [vmem:[#allocation1 + $0x28] sm:$0xff pattern:$0x75316420] }
  0x19   : > { %5523 = vmatpush.msk.msra.mxu2 %vm226_vm0, %v216_v7  ;;  %5525 = vmatpush.msk.msra.mxu3 %vm226_vm0, %v217_v8  ;;  %v220_v11 = vld.sshfl [vmem:[#allocation1 + $0x30] sm:$0xff pattern:$0x75316420]  ;;  %v221_v24 = vld.sshfl [vmem:[#allocation1 + $0x38] sm:$0xff pattern:$0x75316420] }
  0x1a   : > { %5524 = vmatmul.msk.f32.vlgmr.msra.gmra.mxu2 %vm222_vm1, %v6057_v4  ;;  %5526 = vmatmul.msk.f32.vlgmr.msra.gmra.mxu3 %vm222_vm1, %v6057_v4 }
  0x1b   : > { %5527 = vmatpush.msk.msrb.mxu0 %vm226_vm0, %v218_v9  ;;  %5529 = vmatpush.msk.msrb.mxu1 %vm226_vm0, %v219_v10 }
  0x1c   : > { %5531 = vmatpush.msk.msrb.mxu2 %vm226_vm0, %v220_v11  ;;  %5533 = vmatpush.msk.msrb.mxu3 %vm226_vm0, %v221_v24  ;;  %vm2823_vm0 = vcmask 138240  }
  0x20   : > { %5528 = vmatmul.msk.f32.vlgmr.msrb.gmra.mxu0 %vm222_vm1, %v6057_v4  ;;  %5530 = vmatmul.msk.f32.vlgmr.msrb.gmra.mxu1 %vm222_vm1, %v6057_v4 }
  0x22   : > { %5532 = vmatmul.msk.f32.vlgmr.msrb.gmra.mxu2 %vm222_vm1, %v6057_v4  ;;  %5534 = vmatmul.msk.f32.vlgmr.msrb.gmra.mxu3 %vm222_vm1, %v6057_v4  ;;  %v6362_v4 = vld [vmem:[%s7957_s2 + $0x10] sm:$0xff]  ;;  %vm3010_vm1 = vcmask 130048  }
  0x95   : > { %v6080_v12 = vpop.f32.mrf.mxu0  ;;  %v6082_v13 = vpop.f32.mrf.mxu1 }
  0x96   : > { %754 = vrot.lane.b32.xlu2 %v6082_v13, %s5988_s23  ;;  %752 = vrot.lane.b32.xlu1 %v6080_v12, %s5988_s23 }
  0x97   : > { %413 = vrot.lane.b32.xlu0 %v6080_v12, %s5989_s24 }
  0x9d   : > { %v6108_v14 = vpop.f32.mrf.mxu2  ;;  %v6110_v15 = vpop.f32.mrf.mxu3 }
  0x9e   : > { %939 = vrot.lane.b32.xlu2 %v6080_v12, %s5990_s25  ;;  %1128 = vrot.lane.b32.xlu1 %v6082_v13, %s5991_s26  ;;  %v6136_v16 = vpop.f32.mrf.mxu0  ;;  %v6144_v17 = vpop.f32.mrf.mxu1 }
  0x9f   : > { %415 = vrot.lane.b32.xlu0 %v6082_v13, %s5989_s24 }
  0xa5   : > { %v6212_v30 = vpop.f32.mrf.mxu2 }
  0xa6   : > { %1500 = vrot.lane.b32.xlu2 %v6080_v12, %s5992_s27  ;;  %1315 = vrot.lane.b32.xlu1 %v6082_v13, %s5993_s28 }
  0xa7   : > { %941 = vrot.lane.b32.xlu0 %v6082_v13, %s5990_s25 }
  0xae   : > { %1876 = vrot.lane.b32.xlu2 %v6082_v13, %s5994_s29  ;;  %1874 = vrot.lane.b32.xlu1 %v6080_v12, %s5994_s29 }
  0xaf   : > { %1126 = vrot.lane.b32.xlu0 %v6080_v12, %s5991_s26 }
  0xb6   : > { %945 = vrot.lane.b32.xlu2 %v6110_v15, %s5990_s25  ;;  %417 = vrot.lane.b32.xlu1 %v6108_v14, %s5989_s24 }
  0xb7   : > { %1313 = vrot.lane.b32.xlu0 %v6080_v12, %s5993_s28 }
  0xbe   : > { %1130 = vrot.lane.b32.xlu2 %v6108_v14, %s5991_s26  ;;  %419 = vrot.lane.b32.xlu1 %v6110_v15, %s5989_s24 }
  0xbf   : > { %1502 = vrot.lane.b32.xlu0 %v6082_v13, %s5992_s27 }
  0xc6   : > { %1506 = vrot.lane.b32.xlu2 %v6110_v15, %s5992_s27  ;;  %758 = vrot.lane.b32.xlu1 %v6110_v15, %s5988_s23 }
  0xc7   : > { %1689 = vrot.lane.b32.xlu0 %v6082_v13, %s5995_s30 }
  0xce   : > { %1693 = vrot.lane.b32.xlu2 %v6110_v15, %s5995_s30  ;;  %943 = vrot.lane.b32.xlu1 %v6108_v14, %s5990_s25 }
  0xcf   : > { %1687 = vrot.lane.b32.xlu0 %v6080_v12, %s5995_s30 }
  0xd6   : > { %1319 = vrot.lane.b32.xlu1 %v6110_v15, %s5993_s28  ;;  %421 = vrot.lane.b32.xlu2 %v6136_v16, %s5989_s24 }
  0xd7   : > { %756 = vrot.lane.b32.xlu0 %v6108_v14, %s5988_s23 }
  0xde   : > { %1504 = vrot.lane.b32.xlu1 %v6108_v14, %s5992_s27  ;;  %423 = vrot.lane.b32.xlu2 %v6144_v17, %s5989_s24 }
  0xdf   : > { %1132 = vrot.lane.b32.xlu0 %v6110_v15, %s5991_s26 }
  0xe6   : > { %1691 = vrot.lane.b32.xlu1 %v6108_v14, %s5995_s30  ;;  %760 = vrot.lane.b32.xlu2 %v6136_v16, %s5988_s23 }
  0xe7   : > { %1317 = vrot.lane.b32.xlu0 %v6108_v14, %s5993_s28 }
  0xee   : > { %1880 = vrot.lane.b32.xlu1 %v6110_v15, %s5994_s29  ;;  %1136 = vrot.lane.b32.xlu2 %v6144_v17, %s5991_s26 }
  0xef   : > { %1878 = vrot.lane.b32.xlu0 %v6108_v14, %s5994_s29 }
  0xf0   : > { %v6164_v18 = vpop.permute.xlu2 %754 }
  0xf6   : > { %949 = vrot.lane.b32.xlu1 %v6144_v17, %s5990_s25  ;;  %1321 = vrot.lane.b32.xlu2 %v6136_v16, %s5993_s28 }
  0xf7   : > { %762 = vrot.lane.b32.xlu0 %v6144_v17, %s5988_s23 }
  0xf8   : > { %v6172_v19 = vpop.permute.xlu2 %939 }
  0xfe   : > { %1134 = vrot.lane.b32.xlu1 %v6136_v16, %s5991_s26  ;;  %1697 = vrot.lane.b32.xlu2 %v6144_v17, %s5995_s30 }
  0xff   : > { %947 = vrot.lane.b32.xlu0 %v6136_v16, %s5990_s25 }
 0x100   : > { %v6180_v20 = vpop.permute.xlu2 %1500 }
 0x106   : > { %1510 = vrot.lane.b32.xlu1 %v6144_v17, %s5992_s27  ;;  %1882 = vrot.lane.b32.xlu2 %v6136_v16, %s5994_s29 }
 0x107   : > { %1323 = vrot.lane.b32.xlu0 %v6144_v17, %s5993_s28 }
 0x108   : > { %v6188_v21 = vpop.permute.xlu2 %1876  ;;  %v6190_v22 = vpop.permute.xlu1 %752 }
 0x109   : > { %v414_v23 = vpop.permute.xlu0 %413 }
 0x10e   : > { %1695 = vrot.lane.b32.xlu1 %v6136_v16, %s5995_s30  ;;  %2063 = vrot.lane.b32.xlu2 %v6082_v13, %s5996_s5 }
 0x10f   : > { %1508 = vrot.lane.b32.xlu0 %v6136_v16, %s5992_s27 }
 0x110   : > { %v6201_v25 = vpop.permute.xlu2 %945  ;;  %v6203_v26 = vpop.permute.xlu1 %1128 }
 0x111   : > { %v416_v27 = vpop.permute.xlu0 %415 }
 0x112   : > { %v428_v28 = vsel %vm427_vm2, %v414_v23, %v416_v27 }
 0x113   : > { %5536 = vmatpush.msk.msra.mxu0 %vm438_vm3, %v428_v28 }
 0x114   : > { %5537 = vmatmul.msk.f32.vlgmr.msra.gmra.mxu0 %vm434_vm4, %v6210_v29 }
 0x116   : > { %2061 = vrot.lane.b32.xlu1 %v6080_v12, %s5996_s5  ;;  %2067 = vrot.lane.b32.xlu2 %v6110_v15, %s5996_s5 }
 0x117   : > { %425 = vrot.lane.b32.xlu0 %v6212_v30, %s5989_s24  ;;  %s6003_s24 = smov 7  }
 0x118   : > { %v6222_v31 = vpop.permute.xlu2 %1130  ;;  %v6224_v32 = vpop.permute.xlu1 %1315 }
 0x119   : > { %v6226_v33 = vpop.permute.xlu0 %941 }
 0x11e   : > { %2065 = vrot.lane.b32.xlu1 %v6108_v14, %s5996_s5  ;;  %951 = vrot.lane.b32.xlu2 %v6212_v30, %s5990_s25  ;;  %s6010_s25 = smov 44  }
 0x11f   : > { %1884 = vrot.lane.b32.xlu0 %v6144_v17, %s5994_s29 }
 0x120   : > { %v6234_v34 = vpop.permute.xlu2 %1506  ;;  %v6236_v35 = vpop.permute.xlu1 %1874 }
 0x121   : > { %v6238_v36 = vpop.permute.xlu0 %1126 }
 0x126   : > { %764 = vrot.lane.b32.xlu1 %v6212_v30, %s5988_s23  ;;  %1138 = vrot.lane.b32.xlu2 %v6212_v30, %s5991_s26 }
 0x127   : > { %1699 = vrot.lane.b32.xlu0 %v6212_v30, %s5995_s30  ;;  %s6005_s30 = smov 56  }
 0x128   : > { %v6246_v37 = vpop.permute.xlu2 %1693  ;;  %v418_v38 = vpop.permute.xlu1 %417 }
 0x129   : > { %v429_v39 = vsel %vm427_vm2, %v416_v27, %v418_v38  ;;  %v6249_v40 = vpop.permute.xlu0 %1313 }
 0x12a   : > { %5538 = vmatpush.msk.msra.mxu1 %vm438_vm3, %v429_v39 }
 0x12b   : > { %5539 = vmatmul.msk.f32.vlgmr.msra.gmra.mxu1 %vm434_vm4, %v6210_v29 }
 0x12e   : > { %1325 = vrot.lane.b32.xlu1 %v6212_v30, %s5993_s28  ;;  %1512 = vrot.lane.b32.xlu2 %v6212_v30, %s5992_s27  ;;  %s6004_s27 = smov 6  }
 0x12f   : > { %1886 = vrot.lane.b32.xlu0 %v6212_v30, %s5994_s29 }
 0x130   : > { %v420_v41 = vpop.permute.xlu1 %419  ;;  %v422_v42 = vpop.permute.xlu2 %421 }
 0x131   : > { %v430_v43 = vsel %vm427_vm2, %v418_v38, %v420_v41  ;;  %v6261_v44 = vpop.permute.xlu0 %1502  ;;  %v431_v45 = vsel %vm427_vm2, %v420_v41, %v422_v42 }
 0x132   : > { %5540 = vmatpush.msk.msra.mxu2 %vm438_vm3, %v430_v43  ;;  %5542 = vmatpush.msk.msra.mxu3 %vm438_vm3, %v431_v45 }
 0x133   : > { %5541 = vmatmul.msk.f32.vlgmr.msra.gmra.mxu2 %vm434_vm4, %v6210_v29  ;;  %5543 = vmatmul.msk.f32.vlgmr.msra.gmra.mxu3 %vm434_vm4, %v6210_v29 }
 0x134   : > { %5550 = vmatpush.msk.msrb.mxu3 %vm438_vm3, %v6080_v12 }
 0x136   : > { %5558 = vmatpush.msk.msra.mxu3 %vm438_vm3, %v6136_v16  ;;  %2071 = vrot.lane.b32.xlu1 %v6144_v17, %s5996_s5 }
 0x137   : > { %2073 = vrot.lane.b32.xlu2 %v6212_v30, %s5996_s5  ;;  %2069 = vrot.lane.b32.xlu0 %v6136_v16, %s5996_s5 }
 0x138   : > { %v6280_v46 = vpop.permute.xlu1 %758  ;;  %v6282_v47 = vpop.permute.xlu2 %423 }
 0x139   : > { %v6284_v48 = vpop.permute.xlu0 %1689  ;;  %v432_v49 = vsel %vm427_vm2, %v422_v42, %v6282_v47 }
 0x13a   : > { %5544 = vmatpush.msk.msrb.mxu0 %vm438_vm3, %v432_v49 }
 0x13b   : > { %5545 = vmatmul.msk.f32.vlgmr.msrb.gmra.mxu0 %vm434_vm4, %v6210_v29  ;;  %5551 = vmatmul.msk.f32.vlgmr.msrb.gmra.mxu3 %vm434_vm4, %v6291_v50 }
 0x13c   : > { %5552 = vmatpush.msk.msra.mxu0 %vm438_vm3, %v6082_v13 }
 0x13e   : > { %5560 = vmatpush.msk.msrb.mxu0 %vm438_vm3, %v6144_v17  ;;  %2250 = vrot.lane.b32.xlu1 %v6082_v13, %s5997_s10 }
 0x13f   : > { %2252 = vrot.lane.b32.xlu2 %v6108_v14, %s5997_s10  ;;  %2248 = vrot.lane.b32.xlu0 %v6080_v12, %s5997_s10 }
 0x140   : > { %v6305_v51 = vpop.permute.xlu1 %943  ;;  %v6307_v52 = vpop.permute.xlu2 %760 }
 0x141   : > { %v6309_v53 = vpop.permute.xlu0 %1687 }
 0x143   : > { %5553 = vmatmul.msk.f32.vlgmr.msra.gmra.mxu0 %vm434_vm4, %v6291_v50  ;;  %5559 = vmatmul.msk.f32.vlgmr.msra.gmra.mxu3 %vm434_vm4, %v6291_v50 }
 0x146   : > { %2256 = vrot.lane.b32.xlu1 %v6136_v16, %s5997_s10 }
 0x147   : > { %2258 = vrot.lane.b32.xlu2 %v6144_v17, %s5997_s10  ;;  %2254 = vrot.lane.b32.xlu0 %v6110_v15, %s5997_s10 }
 0x148   : > { %v6318_v54 = vpop.permute.xlu1 %1319  ;;  %v6320_v55 = vpop.permute.xlu2 %1136 }
 0x149   : > { %v757_v56 = vpop.permute.xlu0 %756 }
 0x14a   : > { %v768_v57 = vsel %vm766_vm5, %v6164_v18, %v757_v56  ;;  %v769_v58 = vsel %vm766_vm5, %v757_v56, %v6280_v46 }
 0x14b   : > { %5567 = vmatpush.msk.msrb.mxu3 %vm438_vm3, %v768_v57  ;;  %5569 = vmatpush.msk.msra.mxu0 %vm438_vm3, %v769_v58  ;;  %v767_v57 = vsel %vm766_vm5, %v6190_v22, %v6164_v18 }
 0x14c   : > { %5561 = vmatmul.msk.f32.vlgmr.msrb.gmra.mxu0 %vm434_vm4, %v6291_v50  ;;  %5568 = vmatmul.msk.f32.vlgmr.msrb.gmra.mxu3 %vm434_vm4, %v6362_v4 }
 0x14e   : > { %2437 = vrot.lane.b32.xlu1 %v6082_v13, %s5998_s11 }
 0x14f   : > { %2439 = vrot.lane.b32.xlu2 %v6108_v14, %s5998_s11  ;;  %2260 = vrot.lane.b32.xlu0 %v6212_v30, %s5997_s10  ;;  %s6013_s10 = smov 34  }
 0x150   : > { %v6333_v59 = vpop.permute.xlu1 %1504  ;;  %v6335_v60 = vpop.permute.xlu2 %1321 }
 0x151   : > { %v6337_v61 = vpop.permute.xlu0 %1132 }
 0x154   : > { %5570 = vmatmul.msk.f32.vlgmr.msra.gmra.mxu0 %vm434_vm4, %v6362_v4 }
 0x156   : > { %2435 = vrot.lane.b32.xlu1 %v6080_v12, %s5998_s11 }
 0x157   : > { %2443 = vrot.lane.b32.xlu2 %v6136_v16, %s5998_s11  ;;  %2441 = vrot.lane.b32.xlu0 %v6110_v15, %s5998_s11 }
 0x158   : > { %v6342_v62 = vpop.permute.xlu1 %1691  ;;  %v6344_v63 = vpop.permute.xlu2 %1697 }
 0x159   : > { %v6346_v0 = vpop.permute.xlu0 %1317 }
 0x15e   : > { %2447 = vrot.lane.b32.xlu1 %v6212_v30, %s5998_s11 }
 0x15f   : > { %2622 = vrot.lane.b32.xlu2 %v6080_v12, %s5999_s12  ;;  %2445 = vrot.lane.b32.xlu0 %v6144_v17, %s5998_s11 }
 0x160   : > { %v6351_v1 = vpop.permute.xlu1 %1880  ;;  %v6353_v2 = vpop.permute.xlu2 %1882 }
 0x161   : > { %v6355_v3 = vpop.permute.xlu0 %1878 }
 0x166   : > { %2626 = vrot.lane.b32.xlu1 %v6108_v14, %s5999_s12 }
 0x167   : > { %2628 = vrot.lane.b32.xlu2 %v6110_v15, %s5999_s12  ;;  %2624 = vrot.lane.b32.xlu0 %v6082_v13, %s5999_s12 }
 0x168   : > { %v6367_v5 = vpop.permute.xlu1 %949  ;;  %v2064_v6 = vpop.permute.xlu2 %2063 }
 0x169   : > { %v6371_v7 = vpop.permute.xlu0 %762 }
 0x16e   : > { %2632 = vrot.lane.b32.xlu1 %v6144_v17, %s5999_s12 }
 0x16f   : > { %2809 = vrot.lane.b32.xlu2 %v6080_v12, %s6000_s17  ;;  %2630 = vrot.lane.b32.xlu0 %v6136_v16, %s5999_s12 }
 0x170   : > { %v6376_v8 = vpop.permute.xlu1 %1134  ;;  %v6378_v9 = vpop.permute.xlu2 %2067 }
 0x171   : > { %v6380_v10 = vpop.permute.xlu0 %947 }
 0x176   : > { %2634 = vrot.lane.b32.xlu1 %v6212_v30, %s5999_s12  ;;  %s6007_s12 = smov 54  }
 0x177   : > { %2813 = vrot.lane.b32.xlu2 %v6108_v14, %s6000_s17  ;;  %2811 = vrot.lane.b32.xlu0 %v6082_v13, %s6000_s17 }
 0x178   : > { %v6385_v11 = vpop.permute.xlu1 %1510  ;;  %v6387_v23 = vpop.permute.xlu2 %951 }
 0x179   : > { %v6389_v24 = vpop.permute.xlu0 %1323 }
 0x17e   : > { %2817 = vrot.lane.b32.xlu1 %v6136_v16, %s6000_s17 }
 0x17f   : > { %2819 = vrot.lane.b32.xlu2 %v6144_v17, %s6000_s17  ;;  %2815 = vrot.lane.b32.xlu0 %v6110_v15, %s6000_s17 }
 0x180   : > { %v6394_v27 = vpop.permute.xlu1 %1695  ;;  %v6396_v28 = vpop.permute.xlu2 %1138 }
 0x181   : > { %v6401_v38 = vsel %vm1701_vm6, %v6394_v27, %v6344_v63  ;;  %v6403_v39 = vpop.permute.xlu0 %1508 }
 0x182   : > { %v6408_v41 = vsel %vm1514_vm7, %v6403_v39, %v6385_v11 }
 0x186   : > { %2996 = vrot.lane.b32.xlu1 %v6080_v12, %s6001_s18 }
 0x187   : > { %2998 = vrot.lane.b32.xlu2 %v6082_v13, %s6001_s18  ;;  %2821 = vrot.lane.b32.xlu0 %v6212_v30, %s6000_s17  ;;  %s6008_s17 = smov 46  }
 0x188   : > { %v2062_v42 = vpop.permute.xlu1 %2061  ;;  %v6415_v43 = vpop.permute.xlu2 %1512 }
 0x189   : > { %v6418_v45 = vsel %vm2075_vm8, %v2062_v42, %v2064_v6  ;;  %v426_v49 = vpop.permute.xlu0 %425 }
 0x18a   : > { %v433_v56 = vsel %vm427_vm2, %v6282_v47, %v426_v49  ;;  %5548 = vmatpush.msk.msrb.mxu2 %vm438_vm3, %v426_v49  ;;  %v771_v49 = vsel %vm766_vm5, %v6307_v52, %v6371_v7  ;;  %vm3200_vm2 = vcmask 64512  }
 0x18b   : > { %5546 = vmatpush.msk.msrb.mxu1 %vm438_vm3, %v433_v56  ;;  %5549 = vmatmul.msk.f32.vlgmr.msrb.gmra.mxu2 %vm434_vm4, %v6210_v29 }
 0x18c   : > { %5556 = vmatpush.msk.msra.mxu2 %vm438_vm3, %v6110_v15  ;;  %5547 = vmatmul.msk.f32.vlgmr.msrb.gmra.mxu1 %vm434_vm4, %v6210_v29 }
 0x18d   : > { %5554 = vmatpush.msk.msra.mxu1 %vm438_vm3, %v6108_v14 }
 0x18e   : > { %5565 = vmatpush.msk.msrb.mxu2 %vm438_vm3, %v767_v57  ;;  %3002 = vrot.lane.b32.xlu1 %v6110_v15, %s6001_s18 }
 0x18f   : > { %5562 = vmatpush.msk.msrb.mxu1 %vm438_vm3, %v6212_v30  ;;  %3000 = vrot.lane.b32.xlu0 %v6108_v14, %s6001_s18 }
 0x190   : > { %3004 = vrot.lane.b32.xlu2 %v6136_v16, %s6001_s18  ;;  %v2066_v18 = vpop.permute.xlu1 %2065 }
 0x191   : > { %v6444_v22 = vpop.permute.xlu2 %2073  ;;  %v6447_v29 = vsel %vm2075_vm8, %v2064_v6, %v2066_v18  ;;  %v6451_v47 = vsel %vm2075_vm8, %v2066_v18, %v6378_v9  ;;  %v6453_v58 = vpop.permute.xlu0 %1884  ;;  %v770_v6 = vsel %vm766_vm5, %v6280_v46, %v6307_v52  ;;  %v957_v18 = vsel %vm953_vm10, %v6201_v25, %v6380_v10 }
 0x192   : > { %v6458_v42 = vsel %vm1888_vm9, %v6353_v2, %v6453_v58 }
 0x193   : > { %5557 = vmatmul.msk.f32.vlgmr.msra.gmra.mxu2 %vm434_vm4, %v6291_v50 }
 0x194   : > { %5573 = vmatpush.msk.msra.mxu2 %vm438_vm3, %v771_v49  ;;  %5555 = vmatmul.msk.f32.vlgmr.msra.gmra.mxu1 %vm434_vm4, %v6291_v50 }
 0x195   : > { %5571 = vmatpush.msk.msra.mxu1 %vm438_vm3, %v770_v6  ;;  %v1141_v6 = vsel %vm1140_vm11, %v6238_v36, %v6203_v26 }
 0x196   : > { %3008 = vrot.lane.b32.xlu1 %v6212_v30, %s6001_s18 }
 0x197   : > { %3006 = vrot.lane.b32.xlu0 %v6144_v17, %s6001_s18 }
 0x198   : > { %3186 = vrot.lane.b32.xlu2 %v6082_v13, %s6002_s19  ;;  %v765_v56 = vpop.permute.xlu1 %764 }
 0x199   : > { %v6478_v57 = vpop.permute.xlu2 %2252  ;;  %v772_v46 = vsel %vm766_vm5, %v6371_v7, %v765_v56  ;;  %v6482_v52 = vpop.permute.xlu0 %1699  ;;  %5577 = vmatpush.msk.msrb.mxu0 %vm438_vm3, %v765_v56  ;;  %v955_v7 = vsel %vm953_vm10, %v6226_v33, %v6305_v51  ;;  %v956_v56 = vsel %vm953_vm10, %v6305_v51, %v6201_v25  ;;  %v959_v51 = vsel %vm953_vm10, %v6367_v5, %v6387_v23 }
 0x19a   : > { %v6491_v49 = vsel %vm1701_vm6, %v6344_v63, %v6482_v52  ;;  %5575 = vmatpush.msk.msra.mxu3 %vm438_vm3, %v772_v46  ;;  %5578 = vmatmul.msk.f32.vlgmr.msrb.gmra.mxu0 %vm434_vm4, %v6362_v4  ;;  %v954_v63 = vsel %vm953_vm10, %v6172_v19, %v6226_v33  ;;  %v5579_v19 = vld [vmem:[%s7957_s2 + $0x18] sm:$0xff]  ;;  %v958_v46 = vsel %vm953_vm10, %v6380_v10, %v6367_v5  ;;  %v6563_v5 = vld [vmem:[%s7957_s2 + $0x20] sm:$0xff]  ;;  %vm3390_vm5 = vcmask 56320  }
 0x19b   : > { %5566 = vmatmul.msk.f32.vlgmr.msrb.gmra.mxu2 %vm434_vm4, %v6362_v4  ;;  %5586 = vmatpush.msk.msra.mxu0 %vm438_vm3, %v957_v18  ;;  %v1144_v18 = vsel %vm1140_vm11, %v6337_v61, %v6376_v8  ;;  %vm4329_vm10 = vcmask 375808  }
 0x19c   : > { %5582 = vmatpush.msk.msrb.mxu2 %vm438_vm3, %v955_v7  ;;  %5563 = vmatmul.msk.f32.vlgmr.msrb.gmra.mxu1 %vm434_vm4, %v6291_v50  ;;  %v1145_v50 = vsel %vm1140_vm11, %v6376_v8, %v6320_v55 }
 0x19d   : > { %5576 = vmatmul.msk.f32.vlgmr.msra.gmra.mxu3 %vm434_vm4, %v6362_v4  ;;  %5580 = vmatpush.msk.msrb.mxu1 %vm438_vm3, %v954_v63 }
 0x19e   : > { %5584 = vmatpush.msk.msrb.mxu3 %vm438_vm3, %v956_v56  ;;  %5595 = vmatpush.msk.msrb.mxu0 %vm438_vm3, %v1141_v6  ;;  %v1143_v6 = vsel %vm1140_vm11, %v6222_v31, %v6337_v61  ;;  %v1328_v56 = vsel %vm1327_vm12, %v6249_v40, %v6224_v32  ;;  %v6601_v61 = vpop.f32.mrf.mxu3 }
 0x19f   : > { %3190 = vrot.lane.b32.xlu1 %v6110_v15, %s6002_s19  ;;  %3188 = vrot.lane.b32.xlu0 %v6108_v14, %s6002_s19 }
 0x1a0   : > { %5592 = vmatpush.msk.msra.mxu3 %vm438_vm3, %v6387_v23  ;;  %3184 = vrot.lane.b32.xlu2 %v6080_v12, %s6002_s19  ;;  %v6530_v25 = vpop.permute.xlu1 %1325  ;;  %v1329_v23 = vsel %vm1327_vm12, %v6224_v32, %v6346_v0 }
 0x1a1   : > { %v6532_v33 = vpop.permute.xlu2 %2258  ;;  %v6534_v36 = vpop.permute.xlu0 %1886 }
 0x1a2   : > { %5587 = vmatmul.msk.f32.vlgmr.msra.gmra.mxu0 %vm434_vm4, %v5579_v19 }
 0x1a3   : > { %5574 = vmatmul.msk.f32.vlgmr.msra.gmra.mxu2 %vm434_vm4, %v6362_v4  ;;  %5603 = vmatpush.msk.msra.mxu0 %vm438_vm3, %v1145_v50  ;;  %v1333_v50 = vsel %vm1327_vm12, %v6389_v24, %v6530_v25 }
 0x1a4   : > { %5590 = vmatpush.msk.msra.mxu2 %vm438_vm3, %v959_v51  ;;  %5572 = vmatmul.msk.f32.vlgmr.msra.gmra.mxu1 %vm434_vm4, %v6362_v4 }
 0x1a5   : > { %5585 = vmatmul.msk.f32.vlgmr.msrb.gmra.mxu3 %vm434_vm4, %v5579_v19  ;;  %5588 = vmatpush.msk.msra.mxu1 %vm438_vm3, %v958_v46  ;;  %v1146_v46 = vsel %vm1140_vm11, %v6320_v55, %v6396_v28  ;;  %v6644_v55 = vld [vmem:[%s7957_s2 + $0x28] sm:$0xff] }
 0x1a6   : > { %5601 = vmatpush.msk.msrb.mxu3 %vm438_vm3, %v1144_v18  ;;  %v1332_v18 = vsel %vm1327_vm12, %v6335_v60, %v6389_v24 }
 0x1a7   : > { %3194 = vrot.lane.b32.xlu1 %v6144_v17, %s6002_s19  ;;  %3192 = vrot.lane.b32.xlu0 %v6136_v16, %s6002_s19 }
 0x1a8   : > { %3196 = vrot.lane.b32.xlu2 %v6212_v30, %s6002_s19  ;;  %v6569_v4 = vpop.permute.xlu1 %2071 }
 0x1a9   : > { %v6571_v8 = vpop.permute.xlu2 %2439  ;;  %v2070_v10 = vpop.permute.xlu0 %2069 }
 0x1aa   : > { %v6578_v7 = vsel %vm2075_vm8, %v6378_v9, %v2070_v10  ;;  %v6582_v63 = vsel %vm2075_vm8, %v2070_v10, %v6569_v4  ;;  %5596 = vmatmul.msk.f32.vlgmr.msrb.gmra.mxu0 %vm434_vm4, %v6563_v5  ;;  %v1142_v9 = vsel %vm1140_vm11, %v6203_v26, %v6222_v31  ;;  %vm4516_vm11 = vcmask 367616  }
 0x1ab   : > { %5583 = vmatmul.msk.f32.vlgmr.msrb.gmra.mxu2 %vm434_vm4, %v5579_v19  ;;  %5612 = vmatpush.msk.msrb.mxu0 %vm438_vm3, %v1329_v23  ;;  %v1517_v23 = vsel %vm1514_vm7, %v6333_v59, %v6234_v34 }
 0x1ac   : > { %5599 = vmatpush.msk.msrb.mxu2 %vm438_vm3, %v1143_v6  ;;  %5581 = vmatmul.msk.f32.vlgmr.msrb.gmra.mxu1 %vm434_vm4, %v5579_v19 }
 0x1ad   : > { %5593 = vmatmul.msk.f32.vlgmr.msra.gmra.mxu3 %vm434_vm4, %v5579_v19  ;;  %5597 = vmatpush.msk.msrb.mxu1 %vm438_vm3, %v1142_v9  ;;  %v1331_v9 = vsel %vm1327_vm12, %v6318_v54, %v6335_v60 }
 0x1ae   : > { %5610 = vmatpush.msk.msra.mxu3 %vm438_vm3, %v1328_v56  ;;  %v1330_v56 = vsel %vm1327_vm12, %v6346_v0, %v6318_v54  ;;  %vm4703_vm12 = vcmask 359424  }
 0x1af   : > { %3374 = vrot.lane.b32.xlu1 %v6080_v12, %s6003_s24  ;;  %3198 = vrot.lane.b32.xlu0 %v6601_v61, %s6002_s19 }
 0x1b0   : > { %3376 = vrot.lane.b32.xlu2 %v6082_v13, %s6003_s24  ;;  %v2251_v26 = vpop.permute.xlu1 %2250 }
 0x1b1   : > { %v6610_v31 = vpop.permute.xlu2 %2443  ;;  %v6614_v32 = vsel %vm2262_vm13, %v2251_v26, %v6478_v57  ;;  %v2249_v40 = vpop.permute.xlu0 %2248 }
 0x1b2   : > { %v6620_v51 = vsel %vm2262_vm13, %v2249_v40, %v2251_v26  ;;  %5604 = vmatmul.msk.f32.vlgmr.msra.gmra.mxu0 %vm434_vm4, %v6563_v5  ;;  %v1516_v26 = vsel %vm1514_vm7, %v6261_v44, %v6333_v59  ;;  %v1515_v40 = vsel %vm1514_vm7, %v6180_v20, %v6261_v44  ;;  %v5624_v20 = vld [vmem:[%s7957_s2 + $0x30] sm:$0xff] }
 0x1b3   : > { %5591 = vmatmul.msk.f32.vlgmr.msra.gmra.mxu2 %vm434_vm4, %v5579_v19  ;;  %5620 = vmatpush.msk.msra.mxu0 %vm438_vm3, %v1333_v50  ;;  %v1520_v50 = vsel %vm1514_vm7, %v6385_v11, %v6415_v43 }
 0x1b4   : > { %5607 = vmatpush.msk.msra.mxu2 %vm438_vm3, %v6396_v28  ;;  %5589 = vmatmul.msk.f32.vlgmr.msra.gmra.mxu1 %vm434_vm4, %v5579_v19 }
 0x1b5   : > { %5602 = vmatmul.msk.f32.vlgmr.msrb.gmra.mxu3 %vm434_vm4, %v6563_v5  ;;  %5605 = vmatpush.msk.msra.mxu1 %vm438_vm3, %v1146_v46 }
 0x1b6   : > { %5618 = vmatpush.msk.msrb.mxu3 %vm438_vm3, %v1332_v18 }
 0x1b7   : > { %3380 = vrot.lane.b32.xlu1 %v6110_v15, %s6003_s24  ;;  %3378 = vrot.lane.b32.xlu0 %v6108_v14, %s6003_s24 }
 0x1b8   : > { %3382 = vrot.lane.b32.xlu2 %v6136_v16, %s6003_s24  ;;  %v2257_v24 = vpop.permute.xlu1 %2256 }
 0x1b9   : > { %v6650_v28 = vpop.permute.xlu2 %2622  ;;  %v6654_v19 = vsel %vm2262_vm13, %v2257_v24, %v6532_v33  ;;  %v6656_v10 = vpop.permute.xlu0 %2254 }
 0x1ba   : > { %v6663_v6 = vsel %vm2262_vm13, %v6656_v10, %v2257_v24  ;;  %5613 = vmatmul.msk.f32.vlgmr.msrb.gmra.mxu0 %vm434_vm4, %v6644_v55  ;;  %v1703_v24 = vsel %vm1701_vm6, %v6284_v48, %v6342_v62 }
 0x1bb   : > { %5600 = vmatmul.msk.f32.vlgmr.msrb.gmra.mxu2 %vm434_vm4, %v6563_v5  ;;  %5629 = vmatpush.msk.msrb.mxu0 %vm438_vm3, %v1517_v23 }
 0x1bc   : > { %5616 = vmatpush.msk.msrb.mxu2 %vm438_vm3, %v1331_v9  ;;  %5598 = vmatmul.msk.f32.vlgmr.msrb.gmra.mxu1 %vm434_vm4, %v6563_v5  ;;  %v1892_v9 = vsel %vm1888_vm9, %v6351_v1, %v6353_v2 }
 0x1bd   : > { %5611 = vmatmul.msk.f32.vlgmr.msra.gmra.mxu3 %vm434_vm4, %v6644_v55  ;;  %5614 = vmatpush.msk.msrb.mxu1 %vm438_vm3, %v1330_v56  ;;  %v1891_v56 = vsel %vm1888_vm9, %v6355_v3, %v6351_v1 }
 0x1be   : > { %5627 = vmatpush.msk.msra.mxu3 %vm438_vm3, %v1516_v26  ;;  %v1890_v26 = vsel %vm1888_vm9, %v6188_v21, %v6355_v3 }
 0x1bf   : > { %3386 = vrot.lane.b32.xlu1 %v6212_v30, %s6003_s24  ;;  %3384 = vrot.lane.b32.xlu0 %v6144_v17, %s6003_s24 }
 0x1c0   : > { %3388 = vrot.lane.b32.xlu2 %v6601_v61, %s6003_s24  ;;  %v2438_v54 = vpop.permute.xlu1 %2437 }
 0x1c1   : > { %v6692_v60 = vpop.permute.xlu2 %2628  ;;  %v6696_v59 = vsel %vm2449_vm14, %v2438_v54, %v6571_v8  ;;  %v6698_v0 = vpop.permute.xlu0 %2260 }
 0x1c2   : > { %5621 = vmatmul.msk.f32.vlgmr.msra.gmra.mxu0 %vm434_vm4, %v6644_v55 }
 0x1c3   : > { %5608 = vmatmul.msk.f32.vlgmr.msra.gmra.mxu2 %vm434_vm4, %v6563_v5  ;;  %5637 = vmatpush.msk.msra.mxu0 %vm438_vm3, %v6415_v43 }
 0x1c4   : > { %5625 = vmatpush.msk.msra.mxu2 %vm438_vm3, %v1515_v40  ;;  %5606 = vmatmul.msk.f32.vlgmr.msra.gmra.mxu1 %vm434_vm4, %v6563_v5  ;;  %v1705_v5 = vsel %vm1701_vm6, %v6246_v37, %v6394_v27  ;;  %v1704_v27 = vsel %vm1701_vm6, %v6342_v62, %v6246_v37 }
 0x1c5   : > { %5619 = vmatmul.msk.f32.vlgmr.msrb.gmra.mxu3 %vm434_vm4, %v6644_v55  ;;  %5622 = vmatpush.msk.msra.mxu1 %vm438_vm3, %v6530_v25 }
 0x1c6   : > { %5635 = vmatpush.msk.msrb.mxu3 %vm438_vm3, %v1520_v50  ;;  %v2265_v50 = vsel %vm2262_vm13, %v6478_v57, %v6656_v10 }
 0x1c7   : > { %3566 = vrot.lane.b32.xlu1 %v6082_v13, %s6004_s27  ;;  %3564 = vrot.lane.b32.xlu0 %v6080_v12, %s6004_s27  ;;  %v1518_v12 = vsel %vm1514_vm7, %v6234_v34, %v6403_v39  ;;  %vm3768_vm7 = vcmask 457728  }
 0x1c8   : > { %3568 = vrot.lane.b32.xlu2 %v6108_v14, %s6004_s27  ;;  %v2436_v44 = vpop.permute.xlu1 %2435 }
 0x1c9   : > { %v6729_v11 = vpop.permute.xlu2 %2809  ;;  %v6732_v43 = vsel %vm2449_vm14, %v2436_v44, %v2438_v54  ;;  %v6734_v25 = vpop.permute.xlu0 %2441  ;;  %v5684_v44 = vld [vmem:[%s7957_s2 + $0x50] sm:$0xff] }
 0x1ca   : > { %5630 = vmatmul.msk.f32.vlgmr.msrb.gmra.mxu0 %vm434_vm4, %v5624_v20  ;;  %v6860_v54 = vpop.f32.mrf.mxu0 }
 0x1cb   : > { %5617 = vmatmul.msk.f32.vlgmr.msrb.gmra.mxu2 %vm434_vm4, %v6644_v55  ;;  %5646 = vmatpush.msk.msrb.mxu0 %vm438_vm3, %v1705_v5 }
 0x1cc   : > { %5633 = vmatpush.msk.msrb.mxu2 %vm438_vm3, %v6408_v41  ;;  %5615 = vmatmul.msk.f32.vlgmr.msrb.gmra.mxu1 %vm434_vm4, %v6644_v55  ;;  %v1889_v41 = vsel %vm1888_vm9, %v6236_v35, %v6188_v21  ;;  %v1702_v35 = vsel %vm1701_vm6, %v6309_v53, %v6284_v48  ;;  %v5639_v48 = vld [vmem:[%s7957_s2 + $0x38] sm:$0xff]  ;;  %vm3580_vm6 = vcmask 48128  }
 0x1cd   : > { %5628 = vmatmul.msk.f32.vlgmr.msra.gmra.mxu3 %vm434_vm4, %v5624_v20  ;;  %5631 = vmatpush.msk.msrb.mxu1 %vm438_vm3, %v1518_v12 }
 0x1ce   : > { %5644 = vmatpush.msk.msra.mxu3 %vm438_vm3, %v1704_v27 }
 0x1cf   : > { %3572 = vrot.lane.b32.xlu1 %v6136_v16, %s6004_s27  ;;  %3570 = vrot.lane.b32.xlu0 %v6110_v15, %s6004_s27 }
 0x1d0   : > { %3574 = vrot.lane.b32.xlu2 %v6144_v17, %s6004_s27  ;;  %v6762_v34 = vpop.permute.xlu1 %2447 }
 0x1d1   : > { %v6764_v39 = vpop.permute.xlu2 %2813  ;;  %v2446_v37 = vpop.permute.xlu0 %2445 }
 0x1d2   : > { %v6771_v46 = vsel %vm2449_vm14, %v6610_v31, %v2446_v37  ;;  %v6775_v18 = vsel %vm2449_vm14, %v2446_v37, %v6762_v34  ;;  %5638 = vmatmul.msk.f32.vlgmr.msra.gmra.mxu0 %vm434_vm4, %v5624_v20  ;;  %v2452_v37 = vsel %vm2449_vm14, %v6571_v8, %v6734_v25 }
 0x1d3   : > { %5626 = vmatmul.msk.f32.vlgmr.msra.gmra.mxu2 %vm434_vm4, %v5624_v20  ;;  %5655 = vmatpush.msk.msra.mxu0 %vm438_vm3, %v1889_v41 }
 0x1d4   : > { %5642 = vmatpush.msk.msra.mxu2 %vm438_vm3, %v1703_v24  ;;  %5623 = vmatmul.msk.f32.vlgmr.msra.gmra.mxu1 %vm434_vm4, %v6644_v55 }
 0x1d5   : > { %5636 = vmatmul.msk.f32.vlgmr.msrb.gmra.mxu3 %vm434_vm4, %v5624_v20  ;;  %5640 = vmatpush.msk.msra.mxu1 %vm438_vm3, %v1702_v35 }
 0x1d6   : > { %5652 = vmatpush.msk.msrb.mxu3 %vm438_vm3, %v6482_v52 }
 0x1d7   : > { %3754 = vrot.lane.b32.xlu1 %v6082_v13, %s6005_s30  ;;  %3576 = vrot.lane.b32.xlu0 %v6212_v30, %s6004_s27 }
 0x1d8   : > { %3756 = vrot.lane.b32.xlu2 %v6108_v14, %s6005_s30  ;;  %v2627_v53 = vpop.permute.xlu1 %2626 }
 0x1d9   : > { %v6802_v62 = vpop.permute.xlu2 %2819  ;;  %v6806_v52 = vsel %vm2636_vm15, %v2627_v53, %v6692_v60  ;;  %v6808_v55 = vpop.permute.xlu0 %2624 }
 0x1da   : > { %v6812_v23 = vsel %vm2636_vm15, %v6808_v55, %v2627_v53  ;;  %5647 = vmatmul.msk.f32.vlgmr.msrb.gmra.mxu0 %vm434_vm4, %v5639_v48 }
 0x1db   : > { %5634 = vmatmul.msk.f32.vlgmr.msrb.gmra.mxu2 %vm434_vm4, %v5624_v20  ;;  %5663 = vmatpush.msk.msrb.mxu0 %vm438_vm3, %v6458_v42  ;;  %v6833_v42 = vld [vmem:[%s7957_s2 + $0x40] sm:$0xff] }
 0x1dc   : > { %5650 = vmatpush.msk.msrb.mxu2 %vm438_vm3, %v6491_v49  ;;  %5632 = vmatmul.msk.f32.vlgmr.msrb.gmra.mxu1 %vm434_vm4, %v5624_v20  ;;  %v6943_v20 = vpop.f32.mrf.mxu3 }
 0x1dd   : > { %5645 = vmatmul.msk.f32.vlgmr.msra.gmra.mxu3 %vm434_vm4, %v5639_v48  ;;  %5648 = vmatpush.msk.msrb.mxu1 %vm438_vm3, %v6401_v38 }
 0x1de   : > { %5661 = vmatpush.msk.msra.mxu3 %vm438_vm3, %v1892_v9 }
 0x1df   : > { %3578 = vrot.lane.b32.xlu1 %v6601_v61, %s6004_s27  ;;  %3758 = vrot.lane.b32.xlu0 %v6110_v15, %s6005_s30 }
 0x1e0   : > { %3760 = vrot.lane.b32.xlu2 %v6136_v16, %s6005_s30  ;;  %v6839_v2 = vpop.permute.xlu1 %2632 }
 0x1e1   : > { %v6841_v49 = vpop.permute.xlu2 %2998  ;;  %v6843_v38 = vpop.permute.xlu0 %2630 }
 0x1e2   : > { %5656 = vmatmul.msk.f32.vlgmr.msra.gmra.mxu0 %vm434_vm4, %v6833_v42 }
 0x1e3   : > { %5643 = vmatmul.msk.f32.vlgmr.msra.gmra.mxu2 %vm434_vm4, %v5639_v48  ;;  %5672 = vmatpush.msk.msra.mxu0 %vm438_vm3, %v6447_v29  ;;  %v2081_v29 = vsel %vm2075_vm8, %v6569_v4, %v6444_v22  ;;  %vm3955_vm8 = vcmask 449536  }
 0x1e4   : > { %5659 = vmatpush.msk.msra.mxu2 %vm438_vm3, %v1891_v56  ;;  %5641 = vmatmul.msk.f32.vlgmr.msra.gmra.mxu1 %vm434_vm4, %v5639_v48  ;;  %v6991_v27 = vpop.f32.mrf.mxu3  ;;  %v2640_v56 = vsel %vm2636_vm15, %v6692_v60, %v6843_v38 }
 0x1e5   : > { %5653 = vmatmul.msk.f32.vlgmr.msrb.gmra.mxu3 %vm434_vm4, %v5639_v48  ;;  %5657 = vmatpush.msk.msra.mxu1 %vm438_vm3, %v1890_v26 }
 0x1e6   : > { %5670 = vmatpush.msk.msrb.mxu3 %vm438_vm3, %v6418_v45  ;;  %v1894_v45 = vsel %vm1888_vm9, %v6453_v58, %v6534_v36  ;;  %v6899_v58 = vld [vmem:[%s7957_s2 + $0x48] sm:$0xff]  ;;  %vm4142_vm9 = vcmask 441344  }
 0x1e7   : > { %3764 = vrot.lane.b32.xlu1 %v6212_v30, %s6005_s30  ;;  %3762 = vrot.lane.b32.xlu0 %v6144_v17, %s6005_s30 }
 0x1e8   : > { %3766 = vrot.lane.b32.xlu2 %v6601_v61, %s6005_s30  ;;  %v6870_v21 = vpop.permute.xlu1 %2634  ;;  %s6011_s30 = smov 36  }
 0x1e9   : > { %v6872_v1 = vpop.permute.xlu0 %2811 }
 0x1ea   : > { %v6874_v3 = vpop.permute.xlu2 %3004  ;;  %5664 = vmatmul.msk.f32.vlgmr.msrb.gmra.mxu0 %vm434_vm4, %v6833_v42 }
 0x1eb   : > { %5651 = vmatmul.msk.f32.vlgmr.msrb.gmra.mxu2 %vm434_vm4, %v5639_v48  ;;  %5680 = vmatpush.msk.msrb.mxu0 %vm438_vm3, %v2081_v29 }
 0x1ec   : > { %5667 = vmatpush.msk.msrb.mxu2 %vm438_vm3, %v6534_v36  ;;  %5649 = vmatmul.msk.f32.vlgmr.msrb.gmra.mxu1 %vm434_vm4, %v5639_v48  ;;  %v6901_v36 = vpop.f32.mrf.mxu0  ;;  %v7031_v24 = vpop.f32.mrf.mxu3 }
 0x1ed   : > { %5662 = vmatmul.msk.f32.vlgmr.msra.gmra.mxu3 %vm434_vm4, %v6833_v42  ;;  %5665 = vmatpush.msk.msrb.mxu1 %vm438_vm3, %v1894_v45 }
 0x1ee   : > { %5678 = vmatpush.msk.msra.mxu3 %vm438_vm3, %v6582_v63 }
 0x1ef   : > { %3945 = vrot.lane.b32.xlu1 %v6110_v15, %s6006_s9  ;;  %3943 = vrot.lane.b32.xlu0 %v6108_v14, %s6006_s9 }
 0x1f0   : > { %3947 = vrot.lane.b32.xlu2 %v6136_v16, %s6006_s9  ;;  %v6907_v4 = vpop.permute.xlu1 %2817 }
 0x1f1   : > { %v6909_v63 = vpop.permute.xlu0 %2815 }
 0x1f2   : > { %v6911_v40 = vpop.permute.xlu2 %3186  ;;  %5673 = vmatmul.msk.f32.vlgmr.msra.gmra.mxu0 %vm434_vm4, %v6899_v58 }
 0x1f3   : > { %5660 = vmatmul.msk.f32.vlgmr.msra.gmra.mxu2 %vm434_vm4, %v6833_v42  ;;  %5689 = vmatpush.msk.msra.mxu0 %vm438_vm3, %v2265_v50 }
 0x1f4   : > { %5676 = vmatpush.msk.msra.mxu2 %vm438_vm3, %v6578_v7  ;;  %5658 = vmatmul.msk.f32.vlgmr.msra.gmra.mxu1 %vm434_vm4, %v6833_v42  ;;  %v6941_v10 = vpop.f32.mrf.mxu0  ;;  %v7075_v45 = vpop.f32.mrf.mxu3 }
 0x1f5   : > { %5671 = vmatmul.msk.f32.vlgmr.msrb.gmra.mxu3 %vm434_vm4, %v6899_v58  ;;  %5674 = vmatpush.msk.msra.mxu1 %vm438_vm3, %v6451_v47 }
 0x1f6   : > { %5687 = vmatpush.msk.msrb.mxu3 %vm438_vm3, %v6614_v32  ;;  %v2268_v32 = vsel %vm2262_vm13, %v6532_v33, %v6698_v0  ;;  %vm4890_vm13 = vcmask 293888  }
 0x1f7   : > { %3949 = vrot.lane.b32.xlu1 %v6144_v17, %s6006_s9  ;;  %3941 = vrot.lane.b32.xlu0 %v6082_v13, %s6006_s9 }
 0x1f8   : > { %3951 = vrot.lane.b32.xlu2 %v6212_v30, %s6006_s9  ;;  %v6937_v57 = vpop.permute.xlu1 %2996 }
 0x1f9   : > { %v6939_v7 = vpop.permute.xlu0 %2821 }
 0x1fa   : > { %v6945_v47 = vpop.permute.xlu2 %3184  ;;  %5681 = vmatmul.msk.f32.vlgmr.msrb.gmra.mxu0 %vm434_vm4, %v6899_v58 }
 0x1fb   : > { %5668 = vmatmul.msk.f32.vlgmr.msrb.gmra.mxu2 %vm434_vm4, %v6833_v42  ;;  %5697 = vmatpush.msk.msrb.mxu0 %vm438_vm3, %v6698_v0  ;;  %v2453_v0 = vsel %vm2449_vm14, %v6734_v25, %v6610_v31  ;;  %v510_v31 = vpop.f32.mrf.mxu2  ;;  %vm5077_vm14 = vcmask 285696  }
 0x1fc   : > { %5685 = vmatpush.msk.msrb.mxu2 %vm438_vm3, %v6620_v51  ;;  %5666 = vmatmul.msk.f32.vlgmr.msrb.gmra.mxu1 %vm434_vm4, %v6833_v42  ;;  %v6967_v51 = vpop.f32.mrf.mxu1  ;;  %v6989_v12 = vpop.f32.mrf.mxu0 }
 0x1fd   : > { %5679 = vmatmul.msk.f32.vlgmr.msra.gmra.mxu3 %vm434_vm4, %v6899_v58  ;;  %5682 = vmatpush.msk.msrb.mxu1 %vm438_vm3, %v6444_v22 }
 0x1fe   : > { %5695 = vmatpush.msk.msra.mxu3 %vm438_vm3, %v2268_v32 }
 0x1ff   : > { %4128 = vrot.lane.b32.xlu1 %v6082_v13, %s6007_s12  ;;  %3953 = vrot.lane.b32.xlu0 %v6601_v61, %s6006_s9 }
 0x200   : > { %4130 = vrot.lane.b32.xlu2 %v6108_v14, %s6007_s12  ;;  %v6976_v33 = vpop.permute.xlu1 %3002 }
 0x201   : > { %v6978_v22 = vpop.permute.xlu0 %3000 }
 0x202   : > { %v6983_v5 = vpop.permute.xlu2 %3196  ;;  %5690 = vmatmul.msk.f32.vlgmr.msra.gmra.mxu0 %vm434_vm4, %v5684_v44 }
 0x203   : > { %5677 = vmatmul.msk.f32.vlgmr.msra.gmra.mxu2 %vm434_vm4, %v6899_v58  ;;  %5706 = vmatpush.msk.msra.mxu0 %vm438_vm3, %v2453_v0  ;;  %v2824_v0 = vsel %vm2823_vm0, %v6729_v11, %v6872_v1 }
 0x204   : > { %5693 = vmatpush.msk.msra.mxu2 %vm438_vm3, %v6654_v19  ;;  %5675 = vmatmul.msk.f32.vlgmr.msra.gmra.mxu1 %vm434_vm4, %v6899_v58 }
 0x205   : > { %5688 = vmatmul.msk.f32.vlgmr.msrb.gmra.mxu3 %vm434_vm4, %v5684_v44  ;;  %5691 = vmatpush.msk.msra.mxu1 %vm438_vm3, %v6663_v6  ;;  %v2637_v6 = vsel %vm2636_vm15, %v6650_v28, %v6808_v55  ;;  %v847_v28 = vpop.f32.mrf.mxu0 }
 0x206   : > { %5704 = vmatpush.msk.msrb.mxu3 %vm438_vm3, %v2452_v37 }
 0x207   : > { %4134 = vrot.lane.b32.xlu1 %v6136_v16, %s6007_s12  ;;  %4132 = vrot.lane.b32.xlu0 %v6110_v15, %s6007_s12 }
 0x208   : > { %4136 = vrot.lane.b32.xlu2 %v6144_v17, %s6007_s12  ;;  %v7010_v19 = vpop.permute.xlu1 %3008 }
 0x209   : > { %v7012_v41 = vpop.permute.xlu0 %3006  ;;  %v7014_v8 = vpop.f32.mrf.mxu1 }
 0x20a   : > { %v7019_v25 = vpop.permute.xlu2 %3376  ;;  %5698 = vmatmul.msk.f32.vlgmr.msrb.gmra.mxu0 %vm434_vm4, %v5684_v44 }
 0x20b   : > { %5686 = vmatmul.msk.f32.vlgmr.msrb.gmra.mxu2 %vm434_vm4, %v5684_v44  ;;  %5715 = vmatpush.msk.msrb.mxu0 %vm438_vm3, %v2637_v6  ;;  %v2829_v6 = vsel %vm2823_vm0, %v6802_v62, %v6939_v7 }
 0x20c   : > { %5702 = vmatpush.msk.msrb.mxu2 %vm438_vm3, %v6696_v59  ;;  %5683 = vmatmul.msk.f32.vlgmr.msrb.gmra.mxu1 %vm434_vm4, %v6899_v58  ;;  %v5699_v59 = vld [vmem:[%s7957_s2 + $0x58] sm:$0xff] }
 0x20d   : > { %5696 = vmatmul.msk.f32.vlgmr.msra.gmra.mxu3 %vm434_vm4, %v5684_v44  ;;  %5700 = vmatpush.msk.msrb.mxu1 %vm438_vm3, %v6732_v43 }
 0x20e   : > { %5712 = vmatpush.msk.msra.mxu3 %vm438_vm3, %v6762_v34  ;;  %v590_v35 = vpop.f32.mrf.mxu2  ;;  %v2641_v34 = vsel %vm2636_vm15, %v6843_v38, %v6839_v2  ;;  %v2825_v38 = vsel %vm2823_vm0, %v6872_v1, %v6764_v39 }
 0x20f   : > { %4315 = vrot.lane.b32.xlu1 %v6082_v13, %s6008_s17  ;;  %4138 = vrot.lane.b32.xlu0 %v6212_v30, %s6007_s12 }
 0x210   : > { %4317 = vrot.lane.b32.xlu2 %v6108_v14, %s6008_s17 }
 0x211   : > { %v7044_v43 = vpop.permute.xlu1 %3190  ;;  %v667_v48 = vpop.f32.mrf.mxu1 }
 0x212   : > { %v7049_v53 = vpop.permute.xlu0 %3188  ;;  %v668_v55 = vadd.f32 %v667_v48, %v510_v31  ;;  %v7051_v9 = vpop.permute.xlu2 %3382  ;;  %5707 = vmatmul.msk.f32.vlgmr.msra.gmra.mxu0 %vm434_vm4, %v5699_v59 }
 0x213   : > { %5694 = vmatmul.msk.f32.vlgmr.msra.gmra.mxu2 %vm434_vm4, %v5684_v44  ;;  %5723 = vmatpush.msk.msra.mxu0 %vm438_vm3, %v2641_v34 }
 0x214   : > { %v7056_v42 = vadd.f32 %v847_v28, %v668_v55  ;;  %5710 = vmatpush.msk.msra.mxu2 %vm438_vm3, %v6775_v18  ;;  %5692 = vmatmul.msk.f32.vlgmr.msra.gmra.mxu1 %vm434_vm4, %v5684_v44  ;;  %v7073_v18 = vld [vmem:[%s7957_s2 + $0x60] sm:$0xff]  ;;  %v2828_v55 = vsel %vm2823_vm0, %v6907_v4, %v6802_v62  ;;  %v7150_v62 = vld [vmem:[%s7957_s2 + $0x68] sm:$0xff] }
 0x215   : > { %5705 = vmatmul.msk.f32.vlgmr.msrb.gmra.mxu3 %vm434_vm4, %v5699_v59  ;;  %5708 = vmatpush.msk.msra.mxu1 %vm438_vm3, %v6771_v46 }
 0x216   : > { %5721 = vmatpush.msk.msrb.mxu3 %vm438_vm3, %v2640_v56  ;;  %v687_v26 = vpop.f32.mrf.mxu2  ;;  %v628_v56 = vadd.f32 %v6991_v27, %v6860_v54 }
 0x217   : > { %4319 = vrot.lane.b32.xlu1 %v6110_v15, %s6008_s17  ;;  %v927_v29 = vpop.f32.mrf.mxu0  ;;  %4140 = vrot.lane.b32.xlu0 %v6601_v61, %s6007_s12 }
 0x218   : > { %4321 = vrot.lane.b32.xlu2 %v6136_v16, %s6008_s17 }
 0x219   : > { %v7081_v60 = vpop.permute.xlu1 %3194  ;;  %v747_v46 = vpop.f32.mrf.mxu1 }
 0x21a   : > { %v7086_v58 = vpop.permute.xlu0 %3192  ;;  %v748_v50 = vadd.f32 %v747_v46, %v590_v35  ;;  %v7088_v32 = vpop.permute.xlu2 %3388  ;;  %5716 = vmatmul.msk.f32.vlgmr.msrb.gmra.mxu0 %vm434_vm4, %v7073_v18  ;;  %v3013_v46 = vsel %vm3010_vm1, %v6978_v22, %v6976_v33 }
 0x21b   : > { %5703 = vmatmul.msk.f32.vlgmr.msrb.gmra.mxu2 %vm434_vm4, %v5699_v59  ;;  %5732 = vmatpush.msk.msrb.mxu0 %vm438_vm3, %v2825_v38 }
 0x21c   : > { %v7094_v44 = vadd.f32 %v927_v29, %v748_v50  ;;  %5719 = vmatpush.msk.msrb.mxu2 %vm438_vm3, %v6806_v52  ;;  %5701 = vmatmul.msk.f32.vlgmr.msrb.gmra.mxu1 %vm434_vm4, %v5699_v59  ;;  %v688_v52 = vadd.f32 %v687_v26, %v6943_v20  ;;  %v2642_v20 = vsel %vm2636_vm15, %v6839_v2, %v6870_v21  ;;  %vm5264_vm15 = vcmask 277504  }
 0x21d   : > { %5713 = vmatmul.msk.f32.vlgmr.msra.gmra.mxu3 %vm434_vm4, %v5699_v59  ;;  %5717 = vmatpush.msk.msrb.mxu1 %vm438_vm3, %v6812_v23 }
 0x21e   : > { %5730 = vmatpush.msk.msra.mxu3 %vm438_vm3, %v2824_v0  ;;  %v807_v31 = vpop.f32.mrf.mxu2 }
 0x21f   : > { %4325 = vrot.lane.b32.xlu1 %v6212_v30, %s6008_s17  ;;  %v1054_v37 = vpop.f32.mrf.mxu0  ;;  %4323 = vrot.lane.b32.xlu0 %v6144_v17, %s6008_s17 }
 0x220   : > { %4327 = vrot.lane.b32.xlu2 %v6601_v61, %s6008_s17  ;;  %v7113_v11 = vpop.f32.mrf.mxu3 }
 0x221   : > { %v7115_v1 = vpop.permute.xlu1 %3374  ;;  %v867_v23 = vpop.f32.mrf.mxu1 }
 0x222   : > { %v7120_v28 = vpop.permute.xlu0 %3198  ;;  %v933_v35 = vadd.f32 %v867_v23, %v688_v52  ;;  %v7122_v48 = vpop.permute.xlu2 %3568  ;;  %5724 = vmatmul.msk.f32.vlgmr.msra.gmra.mxu0 %vm434_vm4, %v7073_v18  ;;  %v708_v52 = vadd.f32 %v7031_v24, %v6901_v36  ;;  %v648_v24 = vadd.f32 %v6941_v10, %v6967_v51 }
 0x223   : > { %5711 = vmatmul.msk.f32.vlgmr.msra.gmra.mxu2 %vm434_vm4, %v5699_v59  ;;  %5740 = vmatpush.msk.msra.mxu0 %vm438_vm3, %v2829_v6 }
 0x224   : > { %v7131_v34 = vadd.f32 %v1054_v37, %v933_v35  ;;  %5727 = vmatpush.msk.msra.mxu2 %vm438_vm3, %v6870_v21  ;;  %5709 = vmatmul.msk.f32.vlgmr.msra.gmra.mxu1 %vm434_vm4, %v5699_v59  ;;  %v930_v59 = vadd.f32 %v807_v31, %v628_v56  ;;  %v2826_v31 = vsel %vm2823_vm0, %v6764_v39, %v6909_v63 }
 0x225   : > { %5722 = vmatmul.msk.f32.vlgmr.msrb.gmra.mxu3 %vm434_vm4, %v7073_v18  ;;  %5725 = vmatpush.msk.msra.mxu1 %vm438_vm3, %v2642_v20  ;;  %v931_v51 = vadd.f32 %v7075_v45, %v648_v24 }
 0x226   : > { %5738 = vmatpush.msk.msrb.mxu3 %vm438_vm3, %v2828_v55  ;;  %v887_v2 = vpop.f32.mrf.mxu2 }
 0x227   : > { %4504 = vrot.lane.b32.xlu1 %v6108_v14, %s6009_s22  ;;  %v1181_v21 = vpop.f32.mrf.mxu0  ;;  %4502 = vrot.lane.b32.xlu0 %v6082_v13, %s6009_s22  ;;  %v934_v23 = vadd.f32 %v887_v2, %v708_v52  ;;  %v3011_v2 = vsel %vm3010_vm1, %v6937_v57, %v6841_v49 }
 0x228   : > { %4506 = vrot.lane.b32.xlu2 %v6110_v15, %s6009_s22  ;;  %v1034_v54 = vpop.f32.mrf.mxu3 }
 0x229   : > { %v7157_v27 = vadd.f32 %v1034_v54, %v7056_v42  ;;  %v7159_v26 = vpop.permute.xlu1 %3380  ;;  %v994_v29 = vpop.f32.mrf.mxu1  ;;  %v2827_v42 = vsel %vm2823_vm0, %v6909_v63, %v6907_v4  ;;  %v3012_v4 = vsel %vm3010_vm1, %v6841_v49, %v6978_v22  ;;  %v3016_v49 = vsel %vm3010_vm1, %v7012_v41, %v7010_v19 }
 0x22a   : > { %v7164_v38 = vpop.permute.xlu0 %3378  ;;  %v1117_v50 = vadd.f32 %v994_v29, %v930_v59  ;;  %v7166_v0 = vpop.permute.xlu2 %3574  ;;  %5733 = vmatmul.msk.f32.vlgmr.msrb.gmra.mxu0 %vm434_vm4, %v7150_v62  ;;  %v3204_v54 = vsel %vm3200_vm2, %v7044_v43, %v7086_v58 }
 0x22b   : > { %5720 = vmatmul.msk.f32.vlgmr.msrb.gmra.mxu2 %vm434_vm4, %v7073_v18  ;;  %5749 = vmatpush.msk.msrb.mxu0 %vm438_vm3, %v3013_v46 }
 0x22c   : > { %v7179_v37 = vadd.f32 %v1181_v21, %v1117_v50  ;;  %5736 = vmatpush.msk.msrb.mxu2 %vm438_vm3, %v2827_v42  ;;  %5718 = vmatmul.msk.f32.vlgmr.msrb.gmra.mxu1 %vm434_vm4, %v7073_v18  ;;  %v3014_v42 = vsel %vm3010_vm1, %v6976_v33, %v6874_v3 }
 0x22d   : > { %5731 = vmatmul.msk.f32.vlgmr.msra.gmra.mxu3 %vm434_vm4, %v7150_v62  ;;  %5734 = vmatpush.msk.msrb.mxu1 %vm438_vm3, %v2826_v31 }
 0x22e   : > { %5747 = vmatpush.msk.msra.mxu3 %vm438_vm3, %v3012_v4  ;;  %v1014_v39 = vpop.f32.mrf.mxu2 }
 0x22f   : > { %4510 = vrot.lane.b32.xlu1 %v6144_v17, %s6009_s22  ;;  %v1261_v63 = vpop.f32.mrf.mxu0  ;;  %4508 = vrot.lane.b32.xlu0 %v6136_v16, %s6009_s22 }
 0x230   : > { %4512 = vrot.lane.b32.xlu2 %v6212_v30, %s6009_s22  ;;  %v1114_v22 = vpop.f32.mrf.mxu3 }
 0x231   : > { %v7200_v6 = vadd.f32 %v1114_v22, %v7094_v44  ;;  %v7202_v35 = vpop.permute.xlu1 %3386  ;;  %v1074_v36 = vpop.f32.mrf.mxu1  ;;  %v728_v44 = vadd.f32 %v6989_v12, %v7014_v8 }
 0x232   : > { %v7206_v20 = vpop.permute.xlu0 %3384  ;;  %v1121_v55 = vadd.f32 %v1074_v36, %v934_v23  ;;  %v7208_v56 = vpop.permute.xlu2 %3756  ;;  %5741 = vmatmul.msk.f32.vlgmr.msra.gmra.mxu0 %vm434_vm4, %v7150_v62 }
 0x233   : > { %5728 = vmatmul.msk.f32.vlgmr.msra.gmra.mxu2 %vm434_vm4, %v7073_v18  ;;  %5757 = vmatpush.msk.msra.mxu0 %vm438_vm3, %v7010_v19  ;;  %v935_v57 = vadd.f32 %v7113_v11, %v728_v44  ;;  %v7241_v19 = vld [vmem:[%s7957_s2 + $0x70] sm:$0xff]  ;;  %v1118_v11 = vadd.f32 %v1014_v39, %v931_v51 }
 0x234   : > { %v7221_v10 = vadd.f32 %v1261_v63, %v1121_v55  ;;  %5745 = vmatpush.msk.msra.mxu2 %vm438_vm3, %v3011_v2  ;;  %5726 = vmatmul.msk.f32.vlgmr.msra.gmra.mxu1 %vm434_vm4, %v7073_v18 }
 0x235   : > { %5739 = vmatmul.msk.f32.vlgmr.msrb.gmra.mxu3 %vm434_vm4, %v7150_v62  ;;  %5742 = vmatpush.msk.msra.mxu1 %vm438_vm3, %v6939_v7 }
 0x236   : > { %5755 = vmatpush.msk.msrb.mxu3 %vm438_vm3, %v3016_v49  ;;  %v1094_v12 = vpop.f32.mrf.mxu2  ;;  %v3395_v49 = vsel %vm3390_vm5, %v7051_v9, %v7206_v20 }
 0x237   : > { %v1122_v8 = vadd.f32 %v1094_v12, %v935_v57  ;;  %4691 = vrot.lane.b32.xlu1 %v6108_v14, %s6010_s25  ;;  %v1388_v18 = vpop.f32.mrf.mxu0  ;;  %4514 = vrot.lane.b32.xlu0 %v6601_v61, %s6009_s22 }
 0x238   : > { %4693 = vrot.lane.b32.xlu2 %v6110_v15, %s6010_s25  ;;  %v1241_v7 = vpop.f32.mrf.mxu3 }
 0x239   : > { %v7248_v45 = vadd.f32 %v1241_v7, %v7131_v34  ;;  %v7250_v21 = vpop.permute.xlu1 %3566  ;;  %v1201_v59 = vpop.f32.mrf.mxu1  ;;  %v3015_v34 = vsel %vm3010_vm1, %v6874_v3, %v7012_v41  ;;  %v3203_v41 = vsel %vm3200_vm2, %v7049_v53, %v7044_v43 }
 0x23a   : > { %v7255_v29 = vpop.permute.xlu0 %3564  ;;  %v1305_v46 = vadd.f32 %v1201_v59, %v1118_v11  ;;  %v7257_v50 = vpop.permute.xlu2 %3760  ;;  %5750 = vmatmul.msk.f32.vlgmr.msrb.gmra.mxu0 %vm434_vm4, %v7241_v19 }
 0x23b   : > { %5737 = vmatmul.msk.f32.vlgmr.msrb.gmra.mxu2 %vm434_vm4, %v7150_v62  ;;  %5766 = vmatpush.msk.msrb.mxu0 %vm438_vm3, %v3204_v54  ;;  %v3582_v54 = vsel %vm3580_vm6, %v7250_v21, %v7122_v48 }
 0x23c   : > { %v7270_v31 = vadd.f32 %v1388_v18, %v1305_v46  ;;  %5753 = vmatpush.msk.msrb.mxu2 %vm438_vm3, %v3015_v34  ;;  %5735 = vmatmul.msk.f32.vlgmr.msrb.gmra.mxu1 %vm434_vm4, %v7150_v62 }
 0x23d   : > { %5748 = vmatmul.msk.f32.vlgmr.msra.gmra.mxu3 %vm434_vm4, %v7241_v19  ;;  %5751 = vmatpush.msk.msrb.mxu1 %vm438_vm3, %v3014_v42 }
 0x23e   : > { %5764 = vmatpush.msk.msra.mxu3 %vm438_vm3, %v3203_v41  ;;  %v1221_v4 = vpop.f32.mrf.mxu2  ;;  %v3392_v41 = vsel %vm3390_vm5, %v7019_v25, %v7164_v38 }
 0x23f   : > { %v1306_v3 = vadd.f32 %v1221_v4, %v7157_v27  ;;  %4689 = vrot.lane.b32.xlu1 %v6082_v13, %s6010_s25  ;;  %v1468_v33 = vpop.f32.mrf.mxu0  ;;  %4695 = vrot.lane.b32.xlu0 %v6136_v16, %s6010_s25  ;;  %v3391_v27 = vsel %vm3390_vm5, %v7115_v1, %v7019_v25  ;;  %v3201_v1 = vsel %vm3200_vm2, %v6945_v47, %v6911_v40 }
 0x240   : > { %4697 = vrot.lane.b32.xlu2 %v6144_v17, %s6010_s25  ;;  %v1368_v43 = vpop.f32.mrf.mxu3 }
 0x241   : > { %v7290_v52 = vadd.f32 %v1368_v43, %v7179_v37  ;;  %v7292_v39 = vpop.permute.xlu1 %3572  ;;  %v1281_v63 = vpop.f32.mrf.mxu1  ;;  %v3202_v37 = vsel %vm3200_vm2, %v6911_v40, %v7049_v53  ;;  %v3207_v53 = vsel %vm3200_vm2, %v6983_v5, %v7120_v28 }
 0x242   : > { %v7297_v23 = vpop.permute.xlu0 %3570  ;;  %v1309_v22 = vadd.f32 %v1281_v63, %v1122_v8  ;;  %v7299_v36 = vpop.permute.xlu2 %3766  ;;  %5758 = vmatmul.msk.f32.vlgmr.msra.gmra.mxu0 %vm434_vm4, %v7241_v19  ;;  %v3205_v8 = vsel %vm3200_vm2, %v7086_v58, %v7081_v60 }
 0x243   : > { %5746 = vmatmul.msk.f32.vlgmr.msra.gmra.mxu2 %vm434_vm4, %v7241_v19  ;;  %5775 = vmatpush.msk.msra.mxu0 %vm438_vm3, %v3391_v27 }
 0x244   : > { %v7312_v24 = vadd.f32 %v1468_v33, %v1309_v22  ;;  %5762 = vmatpush.msk.msra.mxu2 %vm438_vm3, %v3202_v37  ;;  %5743 = vmatmul.msk.f32.vlgmr.msra.gmra.mxu1 %vm434_vm4, %v7150_v62  ;;  %v7330_v62 = vld [vmem:[%s7957_s2 + $0x78] sm:$0xff]  ;;  %v3397_v37 = vsel %vm3390_vm5, %v7202_v35, %v7088_v32  ;;  %v3585_v32 = vsel %vm3580_vm6, %v7292_v39, %v7166_v0 }
 0x245   : > { %5756 = vmatmul.msk.f32.vlgmr.msrb.gmra.mxu3 %vm434_vm4, %v7241_v19  ;;  %5760 = vmatpush.msk.msra.mxu1 %vm438_vm3, %v3201_v1  ;;  %v3396_v1 = vsel %vm3390_vm5, %v7206_v20, %v7202_v35 }
 0x246   : > { %5772 = vmatpush.msk.msrb.mxu3 %vm438_vm3, %v3207_v53  ;;  %v1301_v55 = vpop.f32.mrf.mxu2 }
 0x247   : > { %v1310_v40 = vadd.f32 %v1301_v55, %v7200_v6  ;;  %4701 = vrot.lane.b32.xlu1 %v6601_v61, %s6010_s25  ;;  %v1595_v47 = vpop.f32.mrf.mxu0  ;;  %4699 = vrot.lane.b32.xlu0 %v6212_v30, %s6010_s25  ;;  %v7466_v55 = vld [vmem:[%s7957_s2 + $0x88] sm:$0xff] }
 0x248   : > { %4876 = vrot.lane.b32.xlu2 %v6082_v13, %s6011_s30  ;;  %v1448_v28 = vpop.f32.mrf.mxu3 }
 0x249   : > { %v7337_v2 = vadd.f32 %v1448_v28, %v7221_v10  ;;  %v7339_v6 = vpop.permute.xlu1 %3754  ;;  %v1408_v44 = vpop.f32.mrf.mxu1  ;;  %v3206_v10 = vsel %vm3200_vm2, %v7081_v60, %v6983_v5  ;;  %v3394_v5 = vsel %vm3390_vm5, %v7159_v26, %v7051_v9 }
 0x24a   : > { %v7344_v57 = vpop.permute.xlu0 %3576  ;;  %v1493_v51 = vadd.f32 %v1408_v44, %v1306_v3  ;;  %v7346_v12 = vpop.permute.xlu2 %3947  ;;  %5767 = vmatmul.msk.f32.vlgmr.msrb.gmra.mxu0 %vm434_vm4, %v7330_v62 }
 0x24b   : > { %5754 = vmatmul.msk.f32.vlgmr.msrb.gmra.mxu2 %vm434_vm4, %v7241_v19  ;;  %5783 = vmatpush.msk.msrb.mxu0 %vm438_vm3, %v3395_v49 }
 0x24c   : > { %v7359_v18 = vadd.f32 %v1595_v47, %v1493_v51  ;;  %5770 = vmatpush.msk.msrb.mxu2 %vm438_vm3, %v3206_v10  ;;  %5752 = vmatmul.msk.f32.vlgmr.msrb.gmra.mxu1 %vm434_vm4, %v7241_v19  ;;  %v7377_v19 = vld [vmem:[%s7957_s2 + $0x80] sm:$0xff]  ;;  %v3584_v51 = vsel %vm3580_vm6, %v7297_v23, %v7292_v39  ;;  %v3583_v10 = vsel %vm3580_vm6, %v7122_v48, %v7297_v23 }
 0x24d   : > { %5765 = vmatmul.msk.f32.vlgmr.msra.gmra.mxu3 %vm434_vm4, %v7330_v62  ;;  %5768 = vmatpush.msk.msrb.mxu1 %vm438_vm3, %v3205_v8 }
 0x24e   : > { %5781 = vmatpush.msk.msra.mxu3 %vm438_vm3, %v3394_v5  ;;  %v1428_v11 = vpop.f32.mrf.mxu2 }
 0x24f   : > { %v1494_v60 = vadd.f32 %v1428_v11, %v7248_v45  ;;  %4880 = vrot.lane.b32.xlu1 %v6110_v15, %s6011_s30  ;;  %v1675_v58 = vpop.f32.mrf.mxu0  ;;  %4878 = vrot.lane.b32.xlu0 %v6108_v14, %s6011_s30 }
 0x250   : > { %4882 = vrot.lane.b32.xlu2 %v6136_v16, %s6011_s30  ;;  %v1575_v9 = vpop.f32.mrf.mxu3 }
 0x251   : > { %v7384_v7 = vadd.f32 %v1575_v9, %v7270_v31  ;;  %v7386_v45 = vpop.permute.xlu1 %3578  ;;  %v1488_v59 = vpop.f32.mrf.mxu1  ;;  %v3393_v31 = vsel %vm3390_vm5, %v7164_v38, %v7159_v26  ;;  %v3581_v26 = vsel %vm3580_vm6, %v7255_v29, %v7250_v21 }
 0x252   : > { %v7391_v46 = vpop.permute.xlu0 %3758  ;;  %v1497_v34 = vadd.f32 %v1488_v59, %v1310_v40  ;;  %v7393_v42 = vpop.permute.xlu2 %3951  ;;  %5776 = vmatmul.msk.f32.vlgmr.msra.gmra.mxu0 %vm434_vm4, %v7377_v19 }
 0x253   : > { %5763 = vmatmul.msk.f32.vlgmr.msra.gmra.mxu2 %vm434_vm4, %v7330_v62  ;;  %5792 = vmatpush.msk.msra.mxu0 %vm438_vm3, %v3582_v54  ;;  %v3771_v28 = vsel %vm3768_vm7, %v7391_v46, %v7257_v50  ;;  %v3770_v39 = vsel %vm3768_vm7, %v7208_v56, %v7391_v46  ;;  %v3769_v54 = vsel %vm3768_vm7, %v7339_v6, %v7208_v56 }
 0x254   : > { %v7406_v4 = vadd.f32 %v1675_v58, %v1497_v34  ;;  %5779 = vmatpush.msk.msra.mxu2 %vm438_vm3, %v3393_v31  ;;  %5761 = vmatmul.msk.f32.vlgmr.msra.gmra.mxu1 %vm434_vm4, %v7330_v62  ;;  %v3587_v46 = vsel %vm3580_vm6, %v7344_v57, %v7386_v45 }
 0x255   : > { %5773 = vmatmul.msk.f32.vlgmr.msrb.gmra.mxu3 %vm434_vm4, %v7330_v62  ;;  %5777 = vmatpush.msk.msra.mxu1 %vm438_vm3, %v3392_v41 }
 0x256   : > { %5790 = vmatpush.msk.msrb.mxu3 %vm438_vm3, %v3581_v26  ;;  %v1555_v3 = vpop.f32.mrf.mxu2 }
 0x257   : > { %v1678_v25 = vadd.f32 %v1555_v3, %v7290_v52  ;;  %4886 = vrot.lane.b32.xlu1 %v6212_v30, %s6011_s30  ;;  %v1802_v38 = vpop.f32.mrf.mxu0  ;;  %4884 = vrot.lane.b32.xlu0 %v6144_v17, %s6011_s30  ;;  %v3586_v52 = vsel %vm3580_vm6, %v7166_v0, %v7344_v57 }
 0x258   : > { %5063 = vrot.lane.b32.xlu2 %v6082_v13, %s6012_s7  ;;  %v1655_v21 = vpop.f32.mrf.mxu3 }
 0x259   : > { %v7426_v29 = vadd.f32 %v1655_v21, %v7312_v24  ;;  %v7428_v33 = vpop.permute.xlu1 %3764  ;;  %v1615_v43 = vpop.f32.mrf.mxu1 }
 0x25a   : > { %v7433_v63 = vpop.permute.xlu0 %3762  ;;  %v1681_v27 = vadd.f32 %v1615_v43, %v1494_v60  ;;  %v7435_v22 = vpop.permute.xlu2 %4130  ;;  %5784 = vmatmul.msk.f32.vlgmr.msrb.gmra.mxu0 %vm434_vm4, %v7377_v19  ;;  %v3774_v56 = vsel %vm3768_vm7, %v7428_v33, %v7299_v36 }
 0x25b   : > { %5771 = vmatmul.msk.f32.vlgmr.msrb.gmra.mxu2 %vm434_vm4, %v7330_v62  ;;  %5800 = vmatpush.msk.msrb.mxu0 %vm438_vm3, %v3586_v52 }
 0x25c   : > { %v7448_v24 = vadd.f32 %v1802_v38, %v1681_v27  ;;  %5787 = vmatpush.msk.msrb.mxu2 %vm438_vm3, %v3397_v37  ;;  %5769 = vmatmul.msk.f32.vlgmr.msrb.gmra.mxu1 %vm434_vm4, %v7330_v62  ;;  %v3772_v38 = vsel %vm3768_vm7, %v7257_v50, %v7433_v63 }
 0x25d   : > { %5782 = vmatmul.msk.f32.vlgmr.msra.gmra.mxu3 %vm434_vm4, %v7377_v19  ;;  %5785 = vmatpush.msk.msrb.mxu1 %vm438_vm3, %v3396_v1 }
 0x25e   : > { %5798 = vmatpush.msk.msra.mxu3 %vm438_vm3, %v3585_v32  ;;  %v1635_v53 = vpop.f32.mrf.mxu2 }
 0x25f   : > { %v1682_v35 = vadd.f32 %v1635_v53, %v7337_v2  ;;  %4888 = vrot.lane.b32.xlu1 %v6601_v61, %s6011_s30  ;;  %v1929_v20 = vpop.f32.mrf.mxu0  ;;  %5065 = vrot.lane.b32.xlu0 %v6108_v14, %s6012_s7 }
 0x260   : > { %5067 = vrot.lane.b32.xlu2 %v6110_v15, %s6012_s7  ;;  %v1782_v0 = vpop.f32.mrf.mxu3 }
 0x261   : > { %v7473_v40 = vadd.f32 %v1782_v0, %v7359_v18  ;;  %v7475_v47 = vpop.permute.xlu1 %3945  ;;  %v1742_v62 = vpop.f32.mrf.mxu1 }
 0x262   : > { %v7480_v2 = vpop.permute.xlu0 %3943  ;;  %v1865_v44 = vadd.f32 %v1742_v62, %v1678_v25  ;;  %v7482_v49 = vpop.permute.xlu2 %4136  ;;  %5793 = vmatmul.msk.f32.vlgmr.msra.gmra.mxu0 %vm434_vm4, %v7466_v55 }
 0x263   : > { %5780 = vmatmul.msk.f32.vlgmr.msra.gmra.mxu2 %vm434_vm4, %v7377_v19  ;;  %5809 = vmatpush.msk.msra.mxu0 %vm438_vm3, %v3771_v28 }
 0x264   : > { %v7495_v8 = vadd.f32 %v1929_v20, %v1865_v44  ;;  %5796 = vmatpush.msk.msra.mxu2 %vm438_vm3, %v3584_v51  ;;  %5778 = vmatmul.msk.f32.vlgmr.msra.gmra.mxu1 %vm434_vm4, %v7377_v19 }
 0x265   : > { %5791 = vmatmul.msk.f32.vlgmr.msrb.gmra.mxu3 %vm434_vm4, %v7466_v55  ;;  %5794 = vmatpush.msk.msra.mxu1 %vm438_vm3, %v3583_v10 }
 0x266   : > { %5807 = vmatpush.msk.msrb.mxu3 %vm438_vm3, %v3770_v39  ;;  %v1762_v18 = vpop.f32.mrf.mxu2 }
 0x267   : > { %v1866_v48 = vadd.f32 %v1762_v18, %v7384_v7  ;;  %5071 = vrot.lane.b32.xlu1 %v6144_v17, %s6012_s7  ;;  %v2009_v23 = vpop.f32.mrf.mxu0  ;;  %5069 = vrot.lane.b32.xlu0 %v6136_v16, %s6012_s7 }
 0x268   : > { %5073 = vrot.lane.b32.xlu2 %v6212_v30, %s6012_s7  ;;  %v1862_v5 = vpop.f32.mrf.mxu3 }
 0x269   : > { %v7515_v11 = vadd.f32 %v1862_v5, %v7406_v4  ;;  %v7517_v60 = vpop.permute.xlu1 %3949  ;;  %v1822_v58 = vpop.f32.mrf.mxu1 }
 0x26a   : > { %v7519_v9 = vpop.permute.xlu0 %3941  ;;  %v1869_v7 = vadd.f32 %v1822_v58, %v1682_v35  ;;  %v7521_v59 = vpop.permute.xlu2 %4317  ;;  %5801 = vmatmul.msk.f32.vlgmr.msrb.gmra.mxu0 %vm434_vm4, %v7466_v55 }
 0x26b   : > { %5788 = vmatmul.msk.f32.vlgmr.msrb.gmra.mxu2 %vm434_vm4, %v7377_v19  ;;  %5817 = vmatpush.msk.msrb.mxu0 %vm438_vm3, %v7299_v36 }
 0x26c   : > { %v7535_v34 = vadd.f32 %v2009_v23, %v1869_v7  ;;  %5805 = vmatpush.msk.msrb.mxu2 %vm438_vm3, %v3769_v54  ;;  %5786 = vmatmul.msk.f32.vlgmr.msrb.gmra.mxu1 %vm434_vm4, %v7377_v19  ;;  %v7553_v19 = vld [vmem:[%s7957_s2 + $0x90] sm:$0xff] }
 0x26d   : > { %5799 = vmatmul.msk.f32.vlgmr.msra.gmra.mxu3 %vm434_vm4, %v7466_v55  ;;  %5802 = vmatpush.msk.msrb.mxu1 %vm438_vm3, %v3587_v46 }
 0x26e   : > { %5815 = vmatpush.msk.msra.mxu3 %vm438_vm3, %v3774_v56  ;;  %v1842_v6 = vpop.f32.mrf.mxu2 }
 0x26f   : > { %v1870_v57 = vadd.f32 %v1842_v6, %v7426_v29  ;;  %5250 = vrot.lane.b32.xlu1 %v6082_v13, %s6013_s10  ;;  %v2136_v45 = vpop.f32.mrf.mxu0  ;;  %5075 = vrot.lane.b32.xlu0 %v6601_v61, %s6012_s7  ;;  %v3959_v13 = vsel %vm3955_vm8, %v7346_v12, %v7517_v60  ;;  %v3958_v29 = vsel %vm3955_vm8, %v7475_v47, %v7346_v12  ;;  %s5942_s7 = smul.u32 56, %s7961_s16 }
 0x270   : > { %5252 = vrot.lane.b32.xlu2 %v6108_v14, %s6013_s10  ;;  %v1989_v36 = vpop.f32.mrf.mxu3  ;;  %v3773_v14 = vsel %vm3768_vm7, %v7433_v63, %v7428_v33 }
 0x271   : > { %v7560_v31 = vadd.f32 %v1989_v36, %v7448_v24  ;;  %v4129_v41 = vpop.permute.xlu1 %4128  ;;  %v1949_v4 = vpop.f32.mrf.mxu1 }
 0x272   : > { %v3954_v26 = vpop.permute.xlu0 %3953  ;;  %v2053_v3 = vadd.f32 %v1949_v4, %v1866_v48  ;;  %v7565_v25 = vpop.permute.xlu2 %4321  ;;  %5810 = vmatmul.msk.f32.vlgmr.msra.gmra.mxu0 %vm434_vm4, %v7553_v19  ;;  %v4143_v37 = vsel %vm4142_vm9, %v4129_v41, %v7435_v22 }
 0x273   : > { %5797 = vmatmul.msk.f32.vlgmr.msra.gmra.mxu2 %vm434_vm4, %v7466_v55  ;;  %5826 = vmatpush.msk.msra.mxu0 %vm438_vm3, %v3959_v13 }
 0x274   : > { %v7578_v21 = vadd.f32 %v2136_v45, %v2053_v3  ;;  %5813 = vmatpush.msk.msra.mxu2 %vm438_vm3, %v3773_v14  ;;  %5795 = vmatmul.msk.f32.vlgmr.msra.gmra.mxu1 %vm434_vm4, %v7466_v55 }
 0x275   : > { %5808 = vmatmul.msk.f32.vlgmr.msrb.gmra.mxu3 %vm434_vm4, %v7553_v19  ;;  %5811 = vmatpush.msk.msra.mxu1 %vm438_vm3, %v3772_v38 }
 0x276   : > { %5824 = vmatpush.msk.msrb.mxu3 %vm438_vm3, %v3958_v29  ;;  %v1969_v33 = vpop.f32.mrf.mxu2 }
 0x277   : > { %v7591_v50 = vadd.f32 %v1969_v33, %v7473_v40  ;;  %5256 = vrot.lane.b32.xlu1 %v6136_v16, %s6013_s10  ;;  %v2216_v43 = vpop.f32.mrf.mxu0  ;;  %5254 = vrot.lane.b32.xlu0 %v6110_v15, %s6013_s10  ;;  %v3957_v15 = vsel %vm3955_vm8, %v7480_v2, %v7475_v47  ;;  %v3956_v16 = vsel %vm3955_vm8, %v7519_v9, %v7480_v2  ;;  %v7721_v33 = vld [vmem:[%s7957_s2 + $0xa8] sm:$0xff] }
 0x278   : > { %5258 = vrot.lane.b32.xlu2 %v6144_v17, %s6013_s10  ;;  %v2116_v12 = vpop.f32.mrf.mxu3 }
 0x279   : > { %v7600_v52 = vadd.f32 %v2116_v12, %v7495_v8  ;;  %v4135_v63 = vpop.permute.xlu1 %4134  ;;  %v2029_v27 = vpop.f32.mrf.mxu1 }
 0x27a   : > { %v4133_v1 = vpop.permute.xlu0 %4132  ;;  %v2057_v24 = vadd.f32 %v2029_v27, %v1870_v57  ;;  %v7604_v32 = vpop.permute.xlu2 %4327  ;;  %5818 = vmatmul.msk.f32.vlgmr.msrb.gmra.mxu0 %vm434_vm4, %v7553_v19  ;;  %v4146_v51 = vsel %vm4142_vm9, %v4135_v63, %v7482_v49 }
 0x27b   : > { %5806 = vmatmul.msk.f32.vlgmr.msrb.gmra.mxu2 %vm434_vm4, %v7553_v19  ;;  %5835 = vmatpush.msk.msrb.mxu0 %vm438_vm3, %v4143_v37  ;;  %v4144_v58 = vsel %vm4142_vm9, %v7435_v22, %v4133_v1 }
 0x27c   : > { %v2244_v17 = vadd.f32 %v2216_v43, %v2057_v24  ;;  %5822 = vmatpush.msk.msrb.mxu2 %vm438_vm3, %v3957_v15  ;;  %5803 = vmatmul.msk.f32.vlgmr.msrb.gmra.mxu1 %vm434_vm4, %v7466_v55  ;;  %v5819_v55 = vld [vmem:[%s7957_s2 + $0x98] sm:$0xff] }
 0x27d   : > { %5816 = vmatmul.msk.f32.vlgmr.msra.gmra.mxu3 %vm434_vm4, %v7553_v19  ;;  %5820 = vmatpush.msk.msrb.mxu1 %vm438_vm3, %v3956_v16 }
 0x27e   : > { %5832 = vmatpush.msk.msra.mxu3 %vm438_vm3, %v3954_v26  ;;  %v2049_v53 = vpop.f32.mrf.mxu2 }
 0x27f   : > { %v7625_v35 = vadd.f32 %v2049_v53, %v7515_v11  ;;  %5262 = vrot.lane.b32.xlu1 %v6601_v61, %s6013_s10  ;;  %v7629_v20 = vpop.f32.mrf.mxu0  ;;  %5260 = vrot.lane.b32.xlu0 %v6212_v30, %s6013_s10  ;;  %v3961_v61 = vsel %vm3955_vm8, %v7393_v42, %v3954_v26  ;;  %v3960_v30 = vsel %vm3955_vm8, %v7517_v60, %v7393_v42  ;;  %v7666_v42 = vld [vmem:[%s7957_s2 + $0xa0] sm:$0xff]  ;;  %s7942_s10 = scalar_lea.vmem %s7959_s4, %s5942_s7 }
 0x280   : > { %v2196_v0 = vpop.f32.mrf.mxu3  ;;  %v4145_v60 = vsel %vm4142_vm9, %v4133_v1, %v4135_v63 }
 0x281   : > { %v2243_v40 = vadd.f32 %v2196_v0, %v7535_v34  ;;  %v4316_v47 = vpop.permute.xlu1 %4315  ;;  %v2156_v62 = vpop.f32.mrf.mxu1 }
 0x282   : > { %v4139_v28 = vpop.permute.xlu0 %4138  ;;  %5827 = vmatmul.msk.f32.vlgmr.msra.gmra.mxu0 %vm434_vm4, %v5819_v55  ;;  %v7644_v44 = vpop.permute.xlu2 %4506  ;;  %v4330_v9 = vsel %vm4329_vm10, %v4316_v47, %v7521_v59 }
 0x283   : > { %v4147_v2 = vsel %vm4142_vm9, %v7482_v49, %v4139_v28  ;;  %5814 = vmatmul.msk.f32.vlgmr.msra.gmra.mxu2 %vm434_vm4, %v7553_v19 }
 0x284   : > { %5830 = vmatpush.msk.msra.mxu2 %vm438_vm3, %v3961_v61  ;;  %5843 = vmatpush.msk.msra.mxu0 %vm438_vm3, %v4147_v2  ;;  %v5864_v2 = vld [vmem:[%s7957_s2 + $0xb0] sm:$0xff] }
 0x285   : > { %5812 = vmatmul.msk.f32.vlgmr.msra.gmra.mxu1 %vm434_vm4, %v7553_v19  ;;  %5825 = vmatmul.msk.f32.vlgmr.msrb.gmra.mxu3 %vm434_vm4, %v5819_v55  ;;  %v2241_v19 = vadd.f32 %v2156_v62, %v7591_v50 }
 0x286   : > { %5828 = vmatpush.msk.msra.mxu1 %vm438_vm3, %v3960_v30  ;;  %5841 = vmatpush.msk.msrb.mxu3 %vm438_vm3, %v4146_v51  ;;  %v2176_v10 = vpop.f32.mrf.mxu2 }
 0x287   : > { %v7659_v8 = vadd.f32 %v2176_v10, %v7560_v31  ;;  %v7661_v39 = vpop.f32.mrf.mxu0  ;;  %v2428_v4 = vadd.f32 %v7629_v20, %v2241_v19 }
 0x288   : > { %v2323_v49 = vpop.f32.mrf.mxu3 }
 0x289   : > { %v2427_v18 = vadd.f32 %v2323_v49, %v7578_v21  ;;  %v4320_v48 = vpop.permute.xlu1 %4319  ;;  %v2236_v23 = vpop.f32.mrf.mxu1 }
 0x28a   : > { %v4331_v5 = vsel %vm4329_vm10, %v7521_v59, %v4320_v48  ;;  %v4141_v11 = vpop.permute.xlu0 %4140  ;;  %5836 = vmatmul.msk.f32.vlgmr.msrb.gmra.mxu0 %vm434_vm4, %v7666_v42  ;;  %v7683_v7 = vpop.permute.xlu2 %4512  ;;  %v2245_v43 = vadd.f32 %v2236_v23, %v7625_v35  ;;  %v4332_v63 = vsel %vm4329_vm10, %v4320_v48, %v7565_v25 }
 0x28b   : > { %5823 = vmatmul.msk.f32.vlgmr.msrb.gmra.mxu2 %vm434_vm4, %v5819_v55  ;;  %5852 = vmatpush.msk.msrb.mxu0 %vm438_vm3, %v4331_v5  ;;  %v4148_v31 = vsel %vm4142_vm9, %v4139_v28, %v4141_v11 }
 0x28c   : > { %5839 = vmatpush.msk.msrb.mxu2 %vm438_vm3, %v4145_v60  ;;  %v2432_v37 = vadd.f32 %v7661_v39, %v2245_v43 }
 0x28d   : > { %5821 = vmatmul.msk.f32.vlgmr.msrb.gmra.mxu1 %vm434_vm4, %v5819_v55  ;;  %5833 = vmatmul.msk.f32.vlgmr.msra.gmra.mxu3 %vm434_vm4, %v5819_v55 }
 0x28e   : > { %5837 = vmatpush.msk.msrb.mxu1 %vm438_vm3, %v4144_v58  ;;  %5850 = vmatpush.msk.msra.mxu3 %vm438_vm3, %v4330_v9  ;;  %v2303_v54 = vpop.f32.mrf.mxu2 }
 0x28f   : > { %v7688_v46 = vadd.f32 %v2303_v54, %v7600_v52  ;;  %v7690_v34 = vpop.f32.mrf.mxu0 }
 0x290   : > { %v2403_v22 = vpop.f32.mrf.mxu3 }
 0x291   : > { %v2431_v56 = vadd.f32 %v2403_v22, %v2244_v17  ;;  %v4326_v6 = vpop.permute.xlu1 %4325  ;;  %v7692_v59 = vpop.f32.mrf.mxu1 }
 0x292   : > { %v4335_v57 = vsel %vm4329_vm10, %v4326_v6, %v7604_v32  ;;  %v4324_v45 = vpop.permute.xlu0 %4323  ;;  %5844 = vmatmul.msk.f32.vlgmr.msra.gmra.mxu0 %vm434_vm4, %v7666_v42  ;;  %v7714_v3 = vpop.permute.xlu2 %4693 }
 0x293   : > { %v4334_v36 = vsel %vm4329_vm10, %v4324_v45, %v4326_v6  ;;  %5831 = vmatmul.msk.f32.vlgmr.msra.gmra.mxu2 %vm434_vm4, %v5819_v55  ;;  %5860 = vmatpush.msk.msra.mxu0 %vm438_vm3, %v4335_v57  ;;  %v4333_v12 = vsel %vm4329_vm10, %v7565_v25, %v4324_v45  ;;  %v2429_v57 = vadd.f32 %v7692_v59, %v7659_v8 }
 0x294   : > { %5847 = vmatpush.msk.msra.mxu2 %vm438_vm3, %v4141_v11 }
 0x295   : > { %5829 = vmatmul.msk.f32.vlgmr.msra.gmra.mxu1 %vm434_vm4, %v5819_v55  ;;  %5842 = vmatmul.msk.f32.vlgmr.msrb.gmra.mxu3 %vm434_vm4, %v7666_v42  ;;  %v2616_v8 = vadd.f32 %v7690_v34, %v2429_v57 }
 0x296   : > { %5845 = vmatpush.msk.msra.mxu1 %vm438_vm3, %v4148_v31  ;;  %5858 = vmatpush.msk.msrb.mxu3 %vm438_vm3, %v4334_v36  ;;  %v2383_v41 = vpop.f32.mrf.mxu2 }
 0x297   : > { %v7710_v13 = vadd.f32 %v2383_v41, %v2243_v40  ;;  %v7712_v26 = vpop.f32.mrf.mxu0 }
 0x298   : > { %v2530_v14 = vpop.f32.mrf.mxu3 }
 0x299   : > { %v2615_v38 = vadd.f32 %v2530_v14, %v2428_v4  ;;  %v4505_v21 = vpop.permute.xlu1 %4504  ;;  %v7716_v29 = vpop.f32.mrf.mxu1 }
 0x29a   : > { %v4503_v50 = vpop.permute.xlu0 %4502  ;;  %5853 = vmatmul.msk.f32.vlgmr.msrb.gmra.mxu0 %vm434_vm4, %v7721_v33  ;;  %v4518_v52 = vsel %vm4516_vm11, %v4505_v21, %v7644_v44  ;;  %v7744_v53 = vpop.permute.xlu2 %4697 }
 0x29b   : > { %5840 = vmatmul.msk.f32.vlgmr.msrb.gmra.mxu2 %vm434_vm4, %v7666_v42  ;;  %v4517_v20 = vsel %vm4516_vm11, %v4503_v50, %v4505_v21 }
 0x29c   : > { %5856 = vmatpush.msk.msrb.mxu2 %vm438_vm3, %v4333_v12  ;;  %v2613_v12 = vadd.f32 %v7716_v29, %v7688_v46  ;;  %v7835_v46 = vld [vmem:[%s7957_s2 + $0xc0] sm:$0xff] }
 0x29d   : > { %5838 = vmatmul.msk.f32.vlgmr.msrb.gmra.mxu1 %vm434_vm4, %v7666_v42  ;;  %5851 = vmatmul.msk.f32.vlgmr.msra.gmra.mxu3 %vm434_vm4, %v7721_v33 }
 0x29e   : > { %5854 = vmatpush.msk.msrb.mxu1 %vm438_vm3, %v4332_v63  ;;  %5867 = vmatpush.msk.msra.mxu3 %vm438_vm3, %v4518_v52  ;;  %v2510_v27 = vpop.f32.mrf.mxu2  ;;  %v2800_v29 = vadd.f32 %v7712_v26, %v2613_v12 }
 0x29f   : > { %v7742_v1 = vadd.f32 %v2510_v27, %v2427_v18  ;;  %v2757_v24 = vpop.f32.mrf.mxu0 }
 0x2a0   : > { %v2610_v15 = vpop.f32.mrf.mxu3 }
 0x2a1   : > { %v2619_v16 = vadd.f32 %v2610_v15, %v2432_v37  ;;  %v4511_v17 = vpop.permute.xlu1 %4510  ;;  %v2570_v25 = vpop.f32.mrf.mxu1 }
 0x2a2   : > { %v4509_v35 = vpop.permute.xlu0 %4508  ;;  %5861 = vmatmul.msk.f32.vlgmr.msra.gmra.mxu0 %vm434_vm4, %v7721_v33  ;;  %v4521_v30 = vsel %vm4516_vm11, %v4511_v17, %v7683_v7  ;;  %v7774_v51 = vpop.permute.xlu2 %4876  ;;  %v2617_v5 = vadd.f32 %v2570_v25, %v7710_v13 }
 0x2a3   : > { %v4519_v55 = vsel %vm4516_vm11, %v7644_v44, %v4509_v35  ;;  %5848 = vmatmul.msk.f32.vlgmr.msra.gmra.mxu2 %vm434_vm4, %v7666_v42  ;;  %v4520_v10 = vsel %vm4516_vm11, %v4509_v35, %v4511_v17 }
 0x2a4   : > { %5865 = vmatpush.msk.msra.mxu2 %vm438_vm3, %v4517_v20  ;;  %5869 = vmatpush.msk.msrb.mxu0 %vm438_vm3, %v4519_v55  ;;  %v2804_v45 = vadd.f32 %v2757_v24, %v2617_v5 }
 0x2a5   : > { %5846 = vmatmul.msk.f32.vlgmr.msra.gmra.mxu1 %vm434_vm4, %v7666_v42  ;;  %5859 = vmatmul.msk.f32.vlgmr.msrb.gmra.mxu3 %vm434_vm4, %v7721_v33 }
 0x2a6   : > { %5862 = vmatpush.msk.msra.mxu1 %vm438_vm3, %v7604_v32  ;;  %v2590_v0 = vpop.f32.mrf.mxu2 }
 0x2a7   : > { %v2618_v40 = vadd.f32 %v2590_v0, %v2431_v56  ;;  %v7761_v47 = vpop.f32.mrf.mxu0 }
 0x2a8   : > { %v2737_v62 = vpop.f32.mrf.mxu3 }
 0x2a9   : > { %v4692_v28 = vpop.permute.xlu1 %4691  ;;  %v2697_v61 = vpop.f32.mrf.mxu1  ;;  %v2803_v43 = vadd.f32 %v2737_v62, %v2616_v8 }
 0x2aa   : > { %v4515_v44 = vpop.permute.xlu0 %4514  ;;  %5870 = vmatmul.msk.f32.vlgmr.msrb.gmra.mxu0 %vm434_vm4, %v5864_v2  ;;  %v4705_v58 = vsel %vm4703_vm12, %v4692_v28, %v7714_v3  ;;  %v7802_v56 = vpop.permute.xlu2 %4882  ;;  %v2801_v59 = vadd.f32 %v2697_v61, %v7742_v1 }
 0x2ab   : > { %v4522_v32 = vsel %vm4516_vm11, %v7683_v7, %v4515_v44  ;;  %5877 = vmatpush.msk.msra.mxu0 %vm438_vm3, %v4515_v44  ;;  %5857 = vmatmul.msk.f32.vlgmr.msrb.gmra.mxu2 %vm434_vm4, %v7721_v33 }
 0x2ac   : > { %5873 = vmatpush.msk.msrb.mxu2 %vm438_vm3, %v4521_v30  ;;  %5875 = vmatpush.msk.msrb.mxu3 %vm438_vm3, %v4522_v32  ;;  %v2988_v52 = vadd.f32 %v7761_v47, %v2801_v59 }
 0x2ad   : > { %5855 = vmatmul.msk.f32.vlgmr.msrb.gmra.mxu1 %vm434_vm4, %v7721_v33  ;;  %5868 = vmatmul.msk.f32.vlgmr.msra.gmra.mxu3 %vm434_vm4, %v5864_v2 }
 0x2ae   : > { %5871 = vmatpush.msk.msrb.mxu1 %vm438_vm3, %v4520_v10  ;;  %v2717_v39 = vpop.f32.mrf.mxu2 }
 0x2af   : > { %v2802_v42 = vadd.f32 %v2717_v39, %v2615_v38  ;;  %v2964_v49 = vpop.f32.mrf.mxu0 }
 0x2b0   : > { %v7783_v18 = vpop.f32.mrf.mxu3 }
 0x2b1   : > { %v4690_v48 = vpop.permute.xlu1 %4689  ;;  %v2777_v23 = vpop.f32.mrf.mxu1  ;;  %v2987_v0 = vadd.f32 %v7783_v18, %v2800_v29  ;;  %v5924_v29 = vld [vmem:[%s7957_s2 + $0xd0] sm:$0xff] }
 0x2b2   : > { %v4696_v11 = vpop.permute.xlu0 %4695  ;;  %v2805_v60 = vadd.f32 %v2777_v23, %v2618_v40  ;;  %5878 = vmatmul.msk.f32.vlgmr.msra.gmra.mxu0 %vm434_vm4, %v5864_v2  ;;  %v4704_v9 = vsel %vm4703_vm12, %v4690_v48, %v4692_v28  ;;  %v5064_v37 = vpop.permute.xlu2 %5063 }
 0x2b3   : > { %v4706_v7 = vsel %vm4703_vm12, %v7714_v3, %v4696_v11  ;;  %v4707_v54 = vsel %vm4703_vm12, %v4696_v11, %v7744_v53  ;;  %5866 = vmatmul.msk.f32.vlgmr.msra.gmra.mxu2 %vm434_vm4, %v5864_v2  ;;  %v5879_v3 = vld [vmem:[%s7957_s2 + $0xb8] sm:$0xff] }
 0x2b4   : > { %v7795_v22 = vadd.f32 %v2964_v49, %v2805_v60  ;;  %5882 = vmatpush.msk.msra.mxu2 %vm438_vm3, %v4705_v58  ;;  %5884 = vmatpush.msk.msra.mxu3 %vm438_vm3, %v4706_v7 }
 0x2b5   : > { %5886 = vmatpush.msk.msrb.mxu0 %vm438_vm3, %v4707_v54  ;;  %5863 = vmatmul.msk.f32.vlgmr.msra.gmra.mxu1 %vm434_vm4, %v7721_v33 }
 0x2b6   : > { %5876 = vmatmul.msk.f32.vlgmr.msrb.gmra.mxu3 %vm434_vm4, %v5864_v2  ;;  %5880 = vmatpush.msk.msra.mxu1 %vm438_vm3, %v4704_v9  ;;  %v2797_v6 = vpop.f32.mrf.mxu2 }
 0x2b7   : > { %v2806_v19 = vadd.f32 %v2797_v6, %v2619_v16  ;;  %v3091_v36 = vpop.f32.mrf.mxu0 }
 0x2b8   : > { %v2944_v31 = vpop.f32.mrf.mxu3 }
 0x2b9   : > { %v7808_v41 = vadd.f32 %v2944_v31, %v2804_v45  ;;  %v4702_v4 = vpop.permute.xlu1 %4701  ;;  %v2904_v13 = vpop.f32.mrf.mxu1 }
 0x2ba   : > { %v4700_v14 = vpop.permute.xlu0 %4699  ;;  %v2989_v38 = vadd.f32 %v2904_v13, %v2802_v42  ;;  %5892 = vmatpush.msk.msrb.mxu3 %vm438_vm3, %v4702_v4  ;;  %5887 = vmatmul.msk.f32.vlgmr.msrb.gmra.mxu0 %vm434_vm4, %v5879_v3  ;;  %v5068_v44 = vpop.permute.xlu2 %5067 }
 0x2bb   : > { %v4708_v21 = vsel %vm4703_vm12, %v7744_v53, %v4700_v14  ;;  %v4709_v33 = vsel %vm4703_vm12, %v4700_v14, %v4702_v4  ;;  %5874 = vmatmul.msk.f32.vlgmr.msrb.gmra.mxu2 %vm434_vm4, %v5864_v2 }
 0x2bc   : > { %v3176_v50 = vadd.f32 %v3091_v36, %v2989_v38  ;;  %5890 = vmatpush.msk.msrb.mxu2 %vm438_vm3, %v4709_v33 }
 0x2bd   : > { %5872 = vmatmul.msk.f32.vlgmr.msrb.gmra.mxu1 %vm434_vm4, %v5864_v2 }
 0x2be   : > { %5885 = vmatmul.msk.f32.vlgmr.msra.gmra.mxu3 %vm434_vm4, %v5879_v3  ;;  %5888 = vmatpush.msk.msrb.mxu1 %vm438_vm3, %v4708_v21  ;;  %v2924_v34 = vpop.f32.mrf.mxu2 }
 0x2bf   : > { %v2990_v63 = vadd.f32 %v2924_v34, %v2803_v43  ;;  %v3171_v27 = vpop.f32.mrf.mxu0 }
 0x2c0   : > { %v3071_v1 = vpop.f32.mrf.mxu3 }
 0x2c1   : > { %v7828_v24 = vadd.f32 %v3071_v1, %v2988_v52  ;;  %v4881_v15 = vpop.permute.xlu1 %4880  ;;  %v2984_v16 = vpop.f32.mrf.mxu1 }
 0x2c2   : > { %v4893_v17 = vsel %vm4890_vm13, %v4881_v15, %v7802_v56  ;;  %v4879_v25 = vpop.permute.xlu0 %4878  ;;  %v2993_v53 = vadd.f32 %v2984_v16, %v2806_v19 }
 0x2c3   : > { %v4891_v35 = vsel %vm4890_vm13, %v7774_v51, %v4879_v25  ;;  %v4892_v20 = vsel %vm4890_vm13, %v4879_v25, %v4881_v15  ;;  %5883 = vmatmul.msk.f32.vlgmr.msra.gmra.mxu2 %vm434_vm4, %v5879_v3 }
 0x2c4   : > { %v3180_v55 = vadd.f32 %v3171_v27, %v2993_v53  ;;  %5895 = vmatpush.msk.msra.mxu0 %vm438_vm3, %v4891_v35  ;;  %5899 = vmatpush.msk.msra.mxu2 %vm438_vm3, %v4893_v17 }
 0x2c5   : > { %5881 = vmatmul.msk.f32.vlgmr.msra.gmra.mxu1 %vm434_vm4, %v5879_v3  ;;  %5896 = vmatmul.msk.f32.vlgmr.msra.gmra.mxu0 %vm434_vm4, %v7835_v46 }
 0x2c6   : > { %5893 = vmatmul.msk.f32.vlgmr.msrb.gmra.mxu3 %vm434_vm4, %v5879_v3  ;;  %5897 = vmatpush.msk.msra.mxu1 %vm438_vm3, %v4892_v20  ;;  %v3051_v26 = vpop.f32.mrf.mxu2 }
 0x2c7   : > { %v3174_v40 = vadd.f32 %v3051_v26, %v2987_v0  ;;  %v3302_v47 = vpop.f32.mrf.mxu0 }
 0x2c8   : > { %v3151_v62 = vpop.f32.mrf.mxu3 }
 0x2c9   : > { %v3179_v28 = vadd.f32 %v3151_v62, %v7795_v22  ;;  %v4887_v61 = vpop.permute.xlu1 %4886  ;;  %v3111_v2 = vpop.f32.mrf.mxu1  ;;  %v7873_v22 = vld [vmem:[%s7957_s2 + $0xc8] sm:$0xff] }
 0x2ca   : > { %v4885_v30 = vpop.permute.xlu0 %4884  ;;  %v3177_v32 = vadd.f32 %v3111_v2, %v2990_v63 }
 0x2cb   : > { %v4894_v51 = vsel %vm4890_vm13, %v7802_v56, %v4885_v30  ;;  %v4895_v10 = vsel %vm4890_vm13, %v4885_v30, %v4887_v61  ;;  %5891 = vmatmul.msk.f32.vlgmr.msrb.gmra.mxu2 %vm434_vm4, %v5879_v3  ;;  %v5074_v56 = vpop.permute.xlu2 %5073 }
 0x2cc   : > { %v3368_v39 = vadd.f32 %v3302_v47, %v3177_v32  ;;  %5901 = vmatpush.msk.msra.mxu3 %vm438_vm3, %v4894_v51  ;;  %5903 = vmatpush.msk.msrb.mxu0 %vm438_vm3, %v4895_v10 }
 0x2cd   : > { %5889 = vmatmul.msk.f32.vlgmr.msrb.gmra.mxu1 %vm434_vm4, %v5879_v3  ;;  %5904 = vmatmul.msk.f32.vlgmr.msrb.gmra.mxu0 %vm434_vm4, %v7835_v46 }
 0x2ce   : > { %5902 = vmatmul.msk.f32.vlgmr.msra.gmra.mxu3 %vm434_vm4, %v7835_v46  ;;  %v3131_v42 = vpop.f32.mrf.mxu2 }
 0x2cf   : > { %v3178_v49 = vadd.f32 %v3131_v42, %v7808_v41  ;;  %v3432_v18 = vpop.f32.mrf.mxu0 }
 0x2d0   : > { %v3282_v48 = vpop.f32.mrf.mxu3 }
 0x2d1   : > { %v3367_v23 = vadd.f32 %v3282_v48, %v3176_v50  ;;  %v4889_v5 = vpop.permute.xlu1 %4888  ;;  %v3242_v11 = vpop.f32.mrf.mxu1 }
 0x2d2   : > { %v4896_v60 = vsel %vm4890_vm13, %v4887_v61, %v4889_v5  ;;  %v5066_v58 = vpop.permute.xlu0 %5065  ;;  %v3365_v9 = vadd.f32 %v3242_v11, %v3174_v40  ;;  %5907 = vmatpush.msk.msrb.mxu2 %vm438_vm3, %v4889_v5 }
 0x2d3   : > { %v5078_v7 = vsel %vm5077_vm14, %v5064_v37, %v5066_v58  ;;  %v5079_v54 = vsel %vm5077_vm14, %v5066_v58, %v5068_v44  ;;  %5900 = vmatmul.msk.f32.vlgmr.msra.gmra.mxu2 %vm434_vm4, %v7835_v46  ;;  %5905 = vmatpush.msk.msrb.mxu1 %vm438_vm3, %v4896_v60  ;;  %v5253_v21 = vpop.permute.xlu2 %5252 }
 0x2d4   : > { %v3555_v6 = vadd.f32 %v3432_v18, %v3365_v9  ;;  %5910 = vmatpush.msk.msrb.mxu3 %vm438_vm3, %v5078_v7  ;;  %5912 = vmatpush.msk.msra.mxu0 %vm438_vm3, %v5079_v54  ;;  %v6014_v18 = vmov 0  }
 0x2d5   : > { %5898 = vmatmul.msk.f32.vlgmr.msra.gmra.mxu1 %vm434_vm4, %v7835_v46  ;;  %5913 = vmatmul.msk.f32.vlgmr.msra.gmra.mxu0 %vm434_vm4, %v7873_v22 }
 0x2d6   : > { %5911 = vmatmul.msk.f32.vlgmr.msrb.gmra.mxu3 %vm434_vm4, %v7873_v22  ;;  %v3262_v57 = vpop.f32.mrf.mxu2  ;;  %5978 = vset.pattern.permute.xlu2 %v6014_v18 }
 0x2d7   : > { %v3366_v45 = vadd.f32 %v3262_v57, %v7828_v24  ;;  %v3512_v19 = vpop.f32.mrf.mxu0  ;;  %5979 = vset.pattern.permute.xlu0 %v6014_v18 }
 0x2d8   : > { %v3362_v36 = vpop.f32.mrf.mxu3 }
 0x2d9   : > { %v3371_v31 = vadd.f32 %v3362_v36, %v3180_v55  ;;  %v5072_v41 = vpop.permute.xlu1 %5071  ;;  %v3322_v4 = vpop.f32.mrf.mxu1 }
 0x2da   : > { %v5082_v13 = vsel %vm5077_vm14, %v5072_v41, %v5074_v56  ;;  %v5070_v3 = vpop.permute.xlu0 %5069  ;;  %v3369_v14 = vadd.f32 %v3322_v4, %v3178_v49 }
 0x2db   : > { %v5080_v38 = vsel %vm5077_vm14, %v5068_v44, %v5070_v3  ;;  %v5081_v8 = vsel %vm5077_vm14, %v5070_v3, %v5072_v41  ;;  %5908 = vmatmul.msk.f32.vlgmr.msrb.gmra.mxu2 %vm434_vm4, %v7835_v46  ;;  %5918 = vmatpush.msk.msra.mxu3 %vm438_vm3, %v5082_v13  ;;  %v5259_v53 = vpop.permute.xlu2 %5258 }
 0x2dc   : > { %v3559_v59 = vadd.f32 %v3512_v19, %v3369_v14  ;;  %5914 = vmatpush.msk.msra.mxu1 %vm438_vm3, %v5080_v38  ;;  %5916 = vmatpush.msk.msra.mxu2 %vm438_vm3, %v5081_v8 }
 0x2dd   : > { %5906 = vmatmul.msk.f32.vlgmr.msrb.gmra.mxu1 %vm434_vm4, %v7835_v46 }
 0x2de   : > { %5919 = vmatmul.msk.f32.vlgmr.msra.gmra.mxu3 %vm434_vm4, %v7873_v22  ;;  %v3342_v33 = vpop.f32.mrf.mxu2 }
 0x2df   : > { %v3370_v50 = vadd.f32 %v3342_v33, %v3179_v28  ;;  %v3642_v43 = vpop.f32.mrf.mxu0 }
 0x2e0   : > { %v3492_v34 = vpop.f32.mrf.mxu3 }
 0x2e1   : > { %v3558_v12 = vadd.f32 %v3492_v34, %v3368_v39  ;;  %v5251_v52 = vpop.permute.xlu1 %5250  ;;  %v3452_v63 = vpop.f32.mrf.mxu1  ;;  %v5435_v39 = vld [vmem:[%s7958_s3] sm:$0xff] }
 0x2e2   : > { %v5265_v27 = vsel %vm5264_vm15, %v5251_v52, %v5253_v21  ;;  %v5076_v37 = vpop.permute.xlu0 %5075  ;;  %v3556_v1 = vadd.f32 %v3452_v63, %v3366_v45  ;;  %5438 = vperm.xlu2 %5978, %v5435_v39  }
 0x2e3   : > { %v5083_v24 = vsel %vm5077_vm14, %v5074_v56, %v5076_v37  ;;  %5922 = vmatpush.msk.msrb.mxu1 %vm438_vm3, %v5076_v37  ;;  %5917 = vmatmul.msk.f32.vlgmr.msra.gmra.mxu2 %vm434_vm4, %v7873_v22 }
 0x2e4   : > { %v3746_v15 = vadd.f32 %v3642_v43, %v3556_v1  ;;  %5920 = vmatpush.msk.msrb.mxu0 %vm438_vm3, %v5083_v24  ;;  %5925 = vmatpush.msk.msrb.mxu2 %vm438_vm3, %v5265_v27 }
 0x2e5   : > { %5915 = vmatmul.msk.f32.vlgmr.msra.gmra.mxu1 %vm434_vm4, %v7873_v22  ;;  %5921 = vmatmul.msk.f32.vlgmr.msrb.gmra.mxu0 %vm434_vm4, %v7873_v22 }
 0x2e6   : > { %v3472_v16 = vpop.f32.mrf.mxu2 }
 0x2e7   : > { %v3557_v17 = vadd.f32 %v3472_v16, %v3367_v23  ;;  %v3722_v25 = vpop.f32.mrf.mxu0 }
 0x2e8   : > { %v3622_v46 = vpop.f32.mrf.mxu3 }
 0x2e9   : > { %v3745_v35 = vadd.f32 %v3622_v46, %v3555_v6  ;;  %v5257_v20 = vpop.permute.xlu1 %5256  ;;  %v3532_v55 = vpop.f32.mrf.mxu1 }
 0x2ea   : > { %v5268_v0 = vsel %vm5264_vm15, %v5257_v20, %v5259_v53  ;;  %v5255_v26 = vpop.permute.xlu0 %5254  ;;  %v3560_v40 = vadd.f32 %v3532_v55, %v3370_v50 }
 0x2eb   : > { %v5266_v47 = vsel %vm5264_vm15, %v5253_v21, %v5255_v26  ;;  %v5267_v62 = vsel %vm5264_vm15, %v5255_v26, %v5257_v20  ;;  %5926 = vmatmul.msk.f32.vlgmr.msrb.gmra.mxu2 %vm434_vm4, %v5924_v29  ;;  %5931 = vmatpush.msk.msra.mxu1 %vm438_vm3, %v5268_v0 }
 0x2ec   : > { %v3750_v28 = vadd.f32 %v3722_v25, %v3560_v40  ;;  %5927 = vmatpush.msk.msrb.mxu3 %vm438_vm3, %v5266_v47  ;;  %5929 = vmatpush.msk.msra.mxu0 %vm438_vm3, %v5267_v62 }
 0x2ed   : > { %5923 = vmatmul.msk.f32.vlgmr.msrb.gmra.mxu1 %vm434_vm4, %v7873_v22  ;;  %5928 = vmatmul.msk.f32.vlgmr.msrb.gmra.mxu3 %vm434_vm4, %v5924_v29 }
 0x2ee   : > { %5930 = vmatmul.msk.f32.vlgmr.msra.gmra.mxu0 %vm434_vm4, %v5924_v29  ;;  %v3552_v61 = vpop.f32.mrf.mxu2 }
 0x2ef   : > { %v3561_v2 = vadd.f32 %v3552_v61, %v3371_v31  ;;  %v3849_v44 = vpop.f32.mrf.mxu0 }
 0x2f0   : > { %v3702_v30 = vpop.f32.mrf.mxu3 }
 0x2f1   : > { %v3749_v32 = vadd.f32 %v3702_v30, %v3559_v59  ;;  %v5263_v51 = vpop.permute.xlu1 %5262  ;;  %v3662_v10 = vpop.f32.mrf.mxu1 }
 0x2f2   : > { %v5261_v42 = vpop.permute.xlu0 %5260  ;;  %v3747_v49 = vadd.f32 %v3662_v10, %v3557_v17  ;;  %5937 = vmatpush.msk.msrb.mxu0 %vm438_vm3, %v5263_v51 }
 0x2f3   : > { %v5269_v48 = vsel %vm5264_vm15, %v5259_v53, %v5261_v42  ;;  %v5270_v23 = vsel %vm5264_vm15, %v5261_v42, %v5263_v51 }
 0x2f4   : > { %v3934_v5 = vadd.f32 %v3849_v44, %v3747_v49  ;;  %5933 = vmatpush.msk.msra.mxu2 %vm438_vm3, %v5269_v48  ;;  %5935 = vmatpush.msk.msra.mxu3 %vm438_vm3, %v5270_v23  ;;  %vm5454_vm3 = vcmask 80896  }
 0x2f5   : > { %5932 = vmatmul.msk.f32.vlgmr.msra.gmra.mxu1 %vm434_vm4, %v5924_v29  ;;  %5934 = vmatmul.msk.f32.vlgmr.msra.gmra.mxu2 %vm434_vm4, %v5924_v29 }
 0x2f6   : > { %5936 = vmatmul.msk.f32.vlgmr.msra.gmra.mxu3 %vm434_vm4, %v5924_v29  ;;  %5938 = vmatmul.msk.f32.vlgmr.msrb.gmra.mxu0 %vm434_vm4, %v5924_v29  ;;  %v3682_v11 = vpop.f32.mrf.mxu2 }
 0x2f7   : > { %v3748_v60 = vadd.f32 %v3682_v11, %v3558_v12  ;;  %v3929_v58 = vpop.f32.mrf.mxu0 }
 0x2f8   : > { %v3829_v9 = vpop.f32.mrf.mxu3 }
 0x2f9   : > { %v3933_v7 = vadd.f32 %v3829_v9, %v3746_v15  ;;  %v3742_v54 = vpop.f32.mrf.mxu1 }
 0x2fa   : > { %v3751_v22 = vadd.f32 %v3742_v54, %v3561_v2 }
 0x2fc   : > { %v3938_v56 = vadd.f32 %v3929_v58, %v3751_v22 }
 0x2fe   : > { %v3809_v6 = vpop.f32.mrf.mxu2 }
 0x2ff   : > { %v3932_v57 = vadd.f32 %v3809_v6, %v3745_v35  ;;  %v4056_v45 = vpop.f32.mrf.mxu0 }
 0x300   : > { %v3909_v19 = vpop.f32.mrf.mxu3 }
 0x301   : > { %v3937_v36 = vadd.f32 %v3909_v19, %v3750_v28 }
 0x302   : > { %v3869_v31 = vpop.f32.mrf.mxu1 }
 0x303   : > { %v3935_v41 = vadd.f32 %v3869_v31, %v3748_v60 }
 0x305   : > { %v4122_v4 = vadd.f32 %v4056_v45, %v3935_v41 }
 0x306   : > { %v3889_v13 = vpop.f32.mrf.mxu2 }
 0x307   : > { %v3936_v3 = vadd.f32 %v3889_v13, %v3749_v32  ;;  %v4183_v14 = vpop.f32.mrf.mxu0 }
 0x308   : > { %v4036_v38 = vpop.f32.mrf.mxu3 }
 0x309   : > { %v4121_v8 = vadd.f32 %v4036_v38, %v3934_v5 }
 0x30a   : > { %v3996_v59 = vpop.f32.mrf.mxu1 }
 0x30b   : > { %v4119_v21 = vadd.f32 %v3996_v59, %v3932_v57 }
 0x30d   : > { %v4306_v33 = vadd.f32 %v4183_v14, %v4119_v21 }
 0x30e   : > { %v4016_v50 = vpop.f32.mrf.mxu2 }
 0x30f   : > { %v4120_v43 = vadd.f32 %v4016_v50, %v3933_v7  ;;  %v4263_v34 = vpop.f32.mrf.mxu0 }
 0x310   : > { %v4116_v12 = vpop.f32.mrf.mxu3 }
 0x311   : > { %v4125_v52 = vadd.f32 %v4116_v12, %v3938_v56 }
 0x312   : > { %v4076_v63 = vpop.f32.mrf.mxu1 }
 0x313   : > { %v4123_v27 = vadd.f32 %v4076_v63, %v3936_v3 }
 0x315   : > { %v7933_v37 = vadd.f32 %v4263_v34, %v4123_v27 }
 0x316   : > { %v4096_v1 = vpop.f32.mrf.mxu2 }
 0x317   : > { %v4124_v24 = vadd.f32 %v4096_v1, %v3937_v36  ;;  %v4390_v15 = vpop.f32.mrf.mxu0 }
 0x318   : > { %v4243_v16 = vpop.f32.mrf.mxu3 }
 0x319   : > { %v4309_v17 = vadd.f32 %v4243_v16, %v4122_v4 }
 0x31a   : > { %v4203_v25 = vpop.f32.mrf.mxu1 }
 0x31b   : > { %v4307_v53 = vadd.f32 %v4203_v25, %v4120_v43 }
 0x31d   : > { %v4494_v46 = vadd.f32 %v4390_v15, %v4307_v53 }
 0x31e   : > { %v4223_v29 = vpop.f32.mrf.mxu2 }
 0x31f   : > { %v4308_v35 = vadd.f32 %v4223_v29, %v4121_v8  ;;  %v4470_v20 = vpop.f32.mrf.mxu0 }
 0x320   : > { %v4370_v55 = vpop.f32.mrf.mxu3 }
 0x321   : > { %v4493_v4 = vadd.f32 %v4370_v55, %v4306_v33 }
 0x322   : > { %v4283_v0 = vpop.f32.mrf.mxu1 }
 0x323   : > { %v4311_v26 = vadd.f32 %v4283_v0, %v4124_v24 }
 0x325   : > { %v7935_v40 = vadd.f32 %v4470_v20, %v4311_v26 }
 0x326   : > { %v4303_v47 = vpop.f32.mrf.mxu2 }
 0x327   : > { %v4312_v62 = vadd.f32 %v4303_v47, %v4125_v52  ;;  %v4597_v61 = vpop.f32.mrf.mxu0 }
 0x328   : > { %v4450_v28 = vpop.f32.mrf.mxu3 }
 0x329   : > { %v4497_v53 = vadd.f32 %v4450_v28, %v7933_v37 }
 0x32a   : > { %v4410_v2 = vpop.f32.mrf.mxu1 }
 0x32b   : > { %v4495_v36 = vadd.f32 %v4410_v2, %v4308_v35 }
 0x32d   : > { %v4682_v13 = vadd.f32 %v4597_v61, %v4495_v36 }
 0x32e   : > { %v4430_v44 = vpop.f32.mrf.mxu2 }
 0x32f   : > { %v4677_v51 = vpop.f32.mrf.mxu0  ;;  %v4496_v8 = vadd.f32 %v4430_v44, %v4309_v17 }
 0x330   : > { %v4577_v30 = vpop.f32.mrf.mxu3 }
 0x331   : > { %v4681_v59 = vadd.f32 %v4577_v30, %v4494_v46 }
 0x332   : > { %v4490_v32 = vpop.f32.mrf.mxu1 }
 0x333   : > { %v4499_v50 = vadd.f32 %v4490_v32, %v4312_v62 }
 0x335   : > { %v4686_v33 = vadd.f32 %v4677_v51, %v4499_v50 }
 0x336   : > { %v4557_v10 = vpop.f32.mrf.mxu2 }
 0x337   : > { %v4804_v49 = vpop.f32.mrf.mxu0  ;;  %v4680_v3 = vadd.f32 %v4557_v10, %v4493_v4 }
 0x339   : > { %v4657_v39 = vpop.f32.mrf.mxu3 }
 0x33a   : > { %v4617_v42 = vpop.f32.mrf.mxu1  ;;  %v4685_v30 = vadd.f32 %v4657_v39, %v7935_v40 }
 0x33b   : > { %v4683_v12 = vadd.f32 %v4617_v42, %v4496_v8 }
 0x33c   : > { %v5439_v16 = vpop.permute.xlu2 %5438 }
 0x33d   : > { %v4870_v29 = vadd.f32 %v4804_v49, %v4683_v12 }
 0x33e   : > { %v4637_v18 = vpop.f32.mrf.mxu2 }
 0x33f   : > { %v4684_v55 = vadd.f32 %v4637_v18, %v4497_v53 }
 0x341   : > { %v4784_v48 = vpop.f32.mrf.mxu3 }
 0x342   : > { %v4744_v23 = vpop.f32.mrf.mxu1  ;;  %v4931_v5 = vpop.f32.mrf.mxu0  ;;  %v4869_v14 = vadd.f32 %v4784_v48, %v4682_v13 }
 0x343   : > { %v4867_v21 = vadd.f32 %v4744_v23, %v4680_v3 }
 0x345   : > { %v5054_v1 = vadd.f32 %v4931_v5, %v4867_v21 }
 0x346   : > { %v4764_v11 = vpop.f32.mrf.mxu2 }
 0x347   : > { %v4868_v52 = vadd.f32 %v4764_v11, %v4681_v59 }
 0x349   : > { %v4864_v60 = vpop.f32.mrf.mxu3 }
 0x34a   : > { %v4824_v58 = vpop.f32.mrf.mxu1  ;;  %v5011_v7 = vpop.f32.mrf.mxu0  ;;  %v4873_v46 = vadd.f32 %v4864_v60, %v4686_v33 }
 0x34b   : > { %v4871_v28 = vadd.f32 %v4824_v58, %v4684_v55 }
 0x34d   : > { %v5058_v23 = vadd.f32 %v5011_v7, %v4871_v28 }
 0x34e   : > { %v4844_v9 = vpop.f32.mrf.mxu2 }
 0x34f   : > { %v4872_v18 = vadd.f32 %v4844_v9, %v4685_v30 }
 0x351   : > { %v4991_v22 = vpop.f32.mrf.mxu3 }
 0x352   : > { %v4951_v54 = vpop.f32.mrf.mxu1  ;;  %v5138_v6 = vpop.f32.mrf.mxu0  ;;  %v5057_v0 = vadd.f32 %v4991_v22, %v4870_v29 }
 0x353   : > { %v5055_v24 = vadd.f32 %v4951_v54, %v4868_v52 }
 0x355   : > { %v5242_v26 = vadd.f32 %v5138_v6, %v5055_v24 }
 0x356   : > { %v4971_v56 = vpop.f32.mrf.mxu2 }
 0x357   : > { %v5056_v43 = vadd.f32 %v4971_v56, %v4869_v14 }
 0x359   : > { %v5118_v45 = vpop.f32.mrf.mxu3 }
 0x35a   : > { %v5031_v57 = vpop.f32.mrf.mxu1  ;;  %v5241_v17 = vadd.f32 %v5118_v45, %v5054_v1 }
 0x35b   : > { %v5059_v11 = vadd.f32 %v5031_v57, %v4872_v18 }
 0x35e   : > { %v5051_v19 = vpop.f32.mrf.mxu2 }
 0x35f   : > { %v5060_v62 = vadd.f32 %v5051_v19, %v4873_v46 }
 0x361   : > { %v5198_v34 = vpop.f32.mrf.mxu3 }
 0x362   : > { %v5158_v31 = vpop.f32.mrf.mxu1  ;;  %v5218_v41 = vpop.f32.mrf.mxu0  ;;  %v5245_v58 = vadd.f32 %v5198_v34, %v5058_v23 }
 0x363   : > { %v5243_v63 = vadd.f32 %v5158_v31, %v5056_v43  ;;  %v5246_v40 = vadd.f32 %v5218_v41, %v5059_v11 }
 0x366   : > { %v5178_v38 = vpop.f32.mrf.mxu2 }
 0x367   : > { %v5244_v61 = vadd.f32 %v5178_v38, %v5057_v0 }
 0x36a   : > { %v5238_v27 = vpop.f32.mrf.mxu1 }
 0x36b   : > { %v5345_v15 = vpop.f32.mrf.mxu0  ;;  %v5247_v32 = vadd.f32 %v5238_v27, %v5060_v62 }
 0x36c   : > { %v5430_v25 = vadd.f32 %v5345_v15, %v5243_v63 }
 0x36e   : > { %v5443_v35 = vadd.f32 %v5439_v16, %v5430_v25  ;;  %v5305_v20 = vpop.f32.mrf.mxu2 }
 0x36f   : > { %v5428_v47 = vadd.f32 %v5305_v20, %v5241_v17 }
 0x370   : > { %5450 = vst [vmem:[%s7942_s10 + $0x10] sm:$0xff] %v5443_v35  ;;  %v5325_v37 = vpop.f32.mrf.mxu3 }
 0x371   : > { %v5441_v2 = vadd.f32 %v5439_v16, %v5428_v47  ;;  %v5429_v44 = vadd.f32 %v5325_v37, %v5242_v26 }
 0x372   : > { %v5365_v51 = vpop.f32.mrf.mxu1 }
 0x373   : > { %5448 = vst [vmem:[%s7942_s10] sm:$0xff] %v5441_v2  ;;  %v5442_v10 = vadd.f32 %v5439_v16, %v5429_v44  ;;  %v5431_v42 = vadd.f32 %v5365_v51, %v5244_v61  ;;  %v5425_v49 = vpop.f32.mrf.mxu0 }
 0x374   : > { %v5434_v48 = vadd.f32 %v5425_v49, %v5247_v32 }
 0x375   : > { %5449 = vst [vmem:[%s7942_s10 + $0x8] sm:$0xff] %v5442_v10  ;;  %v5444_v5 = vadd.f32 %v5439_v16, %v5431_v42 }
 0x376   : > { %v5447_v60 = vadd.f32 %v5439_v16, %v5434_v48 }
 0x377   : > { %5451 = vst [vmem:[%s7942_s10 + $0x18] sm:$0xff] %v5444_v5 }
 0x378   : > { %5455 = vst.msk [vmem:[%s7942_s10 + $0x30] sm:$0xff] %vm5454_vm3, %v5447_v60  ;;  %v5385_v39 = vpop.f32.mrf.mxu2 }
 0x379   : > { %v5432_v54 = vadd.f32 %v5385_v39, %v5245_v58  ;;  %v5405_v22 = vpop.f32.mrf.mxu3 }
 0x37a   : > { %v5433_v56 = vadd.f32 %v5405_v22, %v5246_v40 }
 0x37b   : > { %v5445_v6 = vadd.f32 %v5439_v16, %v5432_v54 }
 0x37c   : > { %v5446_v45 = vadd.f32 %v5439_v16, %v5433_v56 }
 0x37d   : > { %5452 = vst [vmem:[%s7942_s10 + $0x20] sm:$0xff] %v5445_v6 }
 0x37e   : > { %5453 = vst [vmem:[%s7942_s10 + $0x28] sm:$0xff] %v5446_v45 }
 0x37f PF: > { %s14_s15 = sadd.s32 1, %s5986_s15  }
 0x380   : > { %p11_p4 = scmp.ge.s32.totalorder %s14_s15, 4  }
 0x382   :  { %13 = sbr.rel (!%p11_p4) target bundleno = 1 (0x1), region = 95 }

</bundles_post_ra>
